<compile_context>
chip_gen: v5e
topology: v5e:2x2
jax: 0.10.0
libtpu: 0.0.40
codegen_flags: <defaults>
</compile_context>

<pallas_src>
import jax
import jax.numpy as jnp
from jax.experimental import pallas as pl
from jax.experimental.pallas import tpu as pltpu


def _round_up(n, m):
    return ((n + m - 1) // m) * m


# --------------------------------------------------------------------------
# Kernel
# --------------------------------------------------------------------------
def _mlp_kernel(x_ref, w1_ref, b1_ref, w2_ref, b2_ref,
                w4_ref, b4_ref, w5_ref, b5_ref, o_ref):
    """4-layer MLP + sigmoid on one packed batch tile, fully in VMEM.

    x_ref:  (TBP, P*D)   -- P batch rows folded into the lane dim per row
    w*_ref: block-diagonal (P-fold) weights, resident (constant block index)
    o_ref:  (1, R, TBP)  -- lane-dense: batch along lanes, fold index along
                            sublanes (rows >= P are padding)
    """
    cdt = w1_ref.dtype                       # compute/stream dtype (f32 or bf16)

    x = x_ref[...]                                                    # (TBP, P*D)

    h = jnp.dot(x, w1_ref[...], preferred_element_type=jnp.float32)  # (TBP, P*H)
    h = jnp.maximum(h + b1_ref[...], 0.0)                            # ln1 + ReLU

    h = jnp.dot(h.astype(cdt), w2_ref[...],
                preferred_element_type=jnp.float32)                  # (TBP, P*H)
    h = jnp.maximum(h + b2_ref[...], 0.0)                            # ln2 + ReLU

    h = jnp.dot(h.astype(cdt), w4_ref[...],
                preferred_element_type=jnp.float32)                  # (TBP, P*D)
    h = jnp.maximum(h + b4_ref[...], 0.0)                            # ln4 + ReLU

    # ln5 as an NT contraction: (R, P*D) x (TBP, P*D)^T -> (R, TBP).
    # Row p (< P) of w5_ref holds w5 only in the p-th fold's lane slice, so
    # r[p, t] = <h[t, p*D:(p+1)*D], w5>, i.e. the logit of folded row p of
    # packed batch row t -- already lane-dense along the batch.
    r = jax.lax.dot_general(w5_ref[...], h.astype(cdt),
                            dimension_numbers=(((1,), (1,)), ((), ())),
                            preferred_element_type=jnp.float32)      # (R, TBP)
    logits = r + b5_ref[...]                                         # (R, TBP)
    o_ref[...] = jax.nn.sigmoid(logits).reshape(o_ref.shape)         # (1, R, TBP)


# --------------------------------------------------------------------------
# One-time parameter preparation (hoisted out of the forward path)
# --------------------------------------------------------------------------
def prepare_params(params, input_dim, *, compute_dtype=jnp.float32):
    """Build the P-fold block-diagonal weights once; reuse across forwards."""
    D = input_dim
    H = 2 * D
    P = max(1, 128 // D)            # batch-fold factor (K,N fill on the MXU)
    R = _round_up(max(P, 8), 8)     # sublane-padded row count of packed w5

    def block_diag(w):              # (fin, fout) -> (P*fin, P*fout)
        return jnp.kron(jnp.eye(P, dtype=w.dtype), w)

    w1 = block_diag(params["w1"]).astype(compute_dtype)        # (P*D, P*H)
    w2 = block_diag(params["w2"]).astype(compute_dtype)        # (P*H, P*H)
    w4 = block_diag(params["w4"]).astype(compute_dtype)        # (P*H, P*D)

    # Packed w5 for the NT contraction: row p holds w5 in lanes [p*D:(p+1)*D].
    w5_rows = jnp.kron(jnp.eye(P, dtype=jnp.float32),
                       params["w5"].reshape(1, D))              # (P, P*D)
    w5 = jnp.zeros((R, P * D), jnp.float32).at[:P].set(w5_rows)
    w5 = w5.astype(compute_dtype)

    # Biases stay f32: they are added to the f32 accumulators.
    b1 = jnp.tile(params["b1"].reshape(1, H), (1, P)).astype(jnp.float32)
    b2 = jnp.tile(params["b2"].reshape(1, H), (1, P)).astype(jnp.float32)
    b4 = jnp.tile(params["b4"].reshape(1, D), (1, P)).astype(jnp.float32)
    b5 = params["b5"].reshape(1, 1).astype(jnp.float32)

    return dict(P=P, R=R, D=D, H=H, compute_dtype=compute_dtype,
                w1=w1, b1=b1, w2=w2, b2=b2, w4=w4, b4=b4, w5=w5, b5=b5)


# --------------------------------------------------------------------------
# Forward wrapper
# --------------------------------------------------------------------------
def lit_module_forward(x, prep, *, tile_b=2048):
    """x: (B, D) float32.  prep: output of prepare_params().

    tile_b: batch rows per grid step.  Rounded to the packing granularity
    (P*128 rows) and clamped for small batches; when the batch spans at least
    two granules the tile is split so the 'parallel' grid has >= 2 steps
    (keeps both v7x TensorCores busy).
    """
    B, D = x.shape
    assert D == prep["D"], "input_dim mismatch with prepared params"
    P, R, H = prep["P"], prep["R"], prep["H"]
    cdt = prep["compute_dtype"]

    G = P * 128                          # granularity: lane-dense packed tiles
    B_ceil = _round_up(B, G)
    n_g = B_ceil // G
    tile_b = max(G, min(_round_up(tile_b, G), B_ceil))
    if n_g >= 2 and B_ceil // tile_b < 2:
        tile_b = G * pl.cdiv(n_g, 2)     # at least 2 (roughly even) tiles
    B_pad = _round_up(B, tile_b)
    num_tiles = B_pad // tile_b
    TBP = tile_b // P                    # packed rows per tile (multiple of 128)

    x = x.astype(cdt)
    if B_pad != B:
        x = jnp.pad(x, ((0, B_pad - B), (0, 0)))
    # Fold P consecutive batch rows into the lane dim: row r of x_packed holds
    # batch rows [P*r, P*r+P) concatenated along lanes.
    x_packed = x.reshape(B_pad // P, P * D)

    def rep(a):                          # resident operand: constant block idx
        shape = a.shape
        return pl.BlockSpec(shape, lambda i: (0,) * len(shape))

    flops = 2 * B_pad * (D * H + H * H + H * D) + 2 * (B_pad // P) * R * (P * D)
    bytes_accessed = int(
        x_packed.size * x_packed.dtype.itemsize
        + num_tiles * R * TBP * 4
        + sum(prep[k].size * prep[k].dtype.itemsize
              for k in ("w1", "b1", "w2", "b2", "w4", "b4", "w5", "b5")))

    out = pl.pallas_call(
        _mlp_kernel,
        out_shape=jax.ShapeDtypeStruct((num_tiles, R, TBP), jnp.float32),
        grid_spec=pltpu.PrefetchScalarGridSpec(
            num_scalar_prefetch=0,
            grid=(num_tiles,),
            in_specs=[
                pl.BlockSpec((TBP, P * D), lambda i: (i, 0)),   # x batch tile
                rep(prep["w1"]), rep(prep["b1"]),
                rep(prep["w2"]), rep(prep["b2"]),
                rep(prep["w4"]), rep(prep["b4"]),
                rep(prep["w5"]), rep(prep["b5"]),
            ],
            out_specs=pl.BlockSpec((1, R, TBP), lambda i: (i, 0, 0)),
        ),
        compiler_params=pltpu.CompilerParams(
            dimension_semantics=("parallel",)),
        cost_estimate=pl.CostEstimate(
            flops=flops,
            transcendentals=2 * B_pad,      # sigmoid ~ exp + reciprocal per row
            bytes_accessed=bytes_accessed),
    )(x_packed, prep["w1"], prep["b1"], prep["w2"], prep["b2"],
      prep["w4"], prep["b4"], prep["w5"], prep["b5"])

    # (num_tiles, R, TBP) lane-dense slab -> (B, 1) column (PyTorch layout).
    # out[t, p, r] is the prediction for batch index t*tile_b + P*r + p (p < P).
    preds = out[:, :P, :].transpose(0, 2, 1).reshape(B_pad, 1)
    return preds[:B]


# --------------------------------------------------------------------------
# Param init (PyTorch nn.Linear-style) and pure-JAX reference
# --------------------------------------------------------------------------
def init_params(key, input_dim):
    """Deterministic init mimicking PyTorch nn.Linear default U(-1/sqrt(fan_in), +)."""
    D, H = input_dim, 2 * input_dim
    ks = jax.random.split(key, 8)

    def lin(kw, kb, fan_in, fan_out):
        bound = 1.0 / jnp.sqrt(fan_in)
        # PyTorch stores W as (out, in); we pre-transpose to (in, out) for x @ W.
        w = jax.random.uniform(kw, (fan_in, fan_out), jnp.float32, -bound, bound)
        b = jax.random.uniform(kb, (1, fan_out), jnp.float32, -bound, bound)
        return w, b

    w1, b1 = lin(ks[0], ks[1], D, H)   # ln1: D  -> 2D
    w2, b2 = lin(ks[2], ks[3], H, H)   # ln2: 2D -> 2D
    w4, b4 = lin(ks[4], ks[5], H, D)   # ln4: 2D -> D
    w5, b5 = lin(ks[6], ks[7], D, 1)   # ln5: D  -> 1
    return dict(w1=w1, b1=b1, w2=w2, b2=b2, w4=w4, b4=b4, w5=w5, b5=b5)


def reference_forward(x, p):
    h = jnp.maximum(x @ p["w1"] + p["b1"], 0.0)
    h = jnp.maximum(h @ p["w2"] + p["b2"], 0.0)
    h = jnp.maximum(h @ p["w4"] + p["b4"], 0.0)
    return jax.nn.sigmoid(h @ p["w5"] + p["b5"])


if __name__ == "__main__":
    key = jax.random.PRNGKey(0)
    k_x, k_p = jax.random.split(key)

    batch = 1000        # not a tile multiple -> exercises padding + 2-tile split
    input_dim = 32

    x = jax.random.normal(k_x, (batch, input_dim), jnp.float32)
    params = init_params(k_p, input_dim)
    ref = reference_forward(x, params)

    # f32 path: one-time prep, then multi-tile forward (2 tiles of 512 rows,
    # P=4 batch-folding -> (TBP=128, 128) x block-diagonal weights).
    prep_f32 = prepare_params(params, input_dim, compute_dtype=jnp.float32)
    out_f32 = jax.block_until_ready(lit_module_forward(x, prep_f32))
    assert out_f32.shape == (batch, 1)
    assert jnp.allclose(out_f32, ref, atol=1e-5, rtol=1e-5), "f32 mismatch vs reference"

    # bf16 streaming path (halves HBM traffic; f32 MXU accumulation).
    prep_bf16 = prepare_params(params, input_dim, compute_dtype=jnp.bfloat16)
    out_bf16 = jax.block_until_ready(lit_module_forward(x, prep_bf16))
    assert out_bf16.shape == (batch, 1)
    assert jnp.allclose(out_bf16, ref, atol=2e-2, rtol=0.0), "bf16 mismatch vs reference"

    # Tiny batch: single heavily-padded tile, f32, tight tolerance.
    x_small = jax.random.normal(jax.random.PRNGKey(1), (5, input_dim), jnp.float32)
    out_small = jax.block_until_ready(lit_module_forward(x_small, prep_f32))
    assert out_small.shape == (5, 1)
    assert jnp.allclose(out_small, reference_forward(x_small, params),
                        atol=1e-5, rtol=1e-5), "small-batch mismatch vs reference"

    print("KERNEL_OK")
</pallas_src>

<mosaic_0001>
module attributes {stable_mosaic.version = 11 : i64} {
  func.func @_mlp_kernel(%arg0: i32, %arg1: memref<128x128xf32, #tpu.memory_space<vmem>>, %arg2: memref<128x256xf32, #tpu.memory_space<vmem>>, %arg3: memref<1x256xf32, #tpu.memory_space<vmem>>, %arg4: memref<256x256xf32, #tpu.memory_space<vmem>>, %arg5: memref<1x256xf32, #tpu.memory_space<vmem>>, %arg6: memref<256x128xf32, #tpu.memory_space<vmem>>, %arg7: memref<1x128xf32, #tpu.memory_space<vmem>>, %arg8: memref<8x128xf32, #tpu.memory_space<vmem>>, %arg9: memref<1x1xf32, #tpu.memory_space<vmem>>, %arg10: memref<1x8x128xf32, #tpu.memory_space<vmem>>) attributes {dimension_semantics = [#tpu.dimension_semantics<parallel>], iteration_bounds = array<i64: 2>, scalar_prefetch = 0 : i64, scratch_operands = 0 : i64, tpu.core_type = #tpu.core_type<tc>, window_params = [{transform_indices = @transform_0, window_bounds = array<i64: 128, 128>}, {pipeline_mode = #tpu.pipeline_mode<synchronous>, transform_indices = @transform_1, window_bounds = array<i64: 128, 256>}, {pipeline_mode = #tpu.pipeline_mode<synchronous>, transform_indices = @transform_2, window_bounds = array<i64: 1, 256>}, {pipeline_mode = #tpu.pipeline_mode<synchronous>, transform_indices = @transform_3, window_bounds = array<i64: 256, 256>}, {pipeline_mode = #tpu.pipeline_mode<synchronous>, transform_indices = @transform_4, window_bounds = array<i64: 1, 256>}, {pipeline_mode = #tpu.pipeline_mode<synchronous>, transform_indices = @transform_5, window_bounds = array<i64: 256, 128>}, {pipeline_mode = #tpu.pipeline_mode<synchronous>, transform_indices = @transform_6, window_bounds = array<i64: 1, 128>}, {pipeline_mode = #tpu.pipeline_mode<synchronous>, transform_indices = @transform_7, window_bounds = array<i64: 8, 128>}, {pipeline_mode = #tpu.pipeline_mode<synchronous>, transform_indices = @transform_8, window_bounds = array<i64: 1, 1>}, {transform_indices = @transform_9, window_bounds = array<i64: 1, 8, 128>}]} {
    %c0 = arith.constant 0 : index
    %c0_0 = arith.constant 0 : index
    %0 = vector.load %arg1[%c0, %c0_0] : memref<128x128xf32, #tpu.memory_space<vmem>>, vector<128x128xf32>
    %c0_1 = arith.constant 0 : index
    %c0_2 = arith.constant 0 : index
    %1 = vector.load %arg2[%c0_1, %c0_2] : memref<128x256xf32, #tpu.memory_space<vmem>>, vector<128x256xf32>
    %cst = arith.constant dense<0.000000e+00> : vector<128x256xf32>
    %2 = tpu.matmul %0, %1, %cst {dimension_numbers = #tpu.dot_dimension_numbers<[1], [0], [0], [1], [0, 0, 1, 1], [], []>} : vector<128x128xf32>, vector<128x256xf32>, vector<128x256xf32> -> vector<128x256xf32>
    %c0_3 = arith.constant 0 : index
    %c0_4 = arith.constant 0 : index
    %3 = vector.load %arg3[%c0_3, %c0_4] : memref<1x256xf32, #tpu.memory_space<vmem>>, vector<1x256xf32>
    %4 = vector.broadcast %3 : vector<1x256xf32> to vector<128x256xf32>
    %5 = arith.addf %2, %4 : vector<128x256xf32>
    %cst_5 = arith.constant 0.000000e+00 : f32
    %6 = vector.broadcast %cst_5 : f32 to vector<128x256xf32>
    %7 = arith.maximumf %5, %6 : vector<128x256xf32>
    %c0_6 = arith.constant 0 : index
    %c0_7 = arith.constant 0 : index
    %8 = vector.load %arg4[%c0_6, %c0_7] : memref<256x256xf32, #tpu.memory_space<vmem>>, vector<256x256xf32>
    %cst_8 = arith.constant dense<0.000000e+00> : vector<128x256xf32>
    %9 = tpu.matmul %7, %8, %cst_8 {dimension_numbers = #tpu.dot_dimension_numbers<[1], [0], [0], [1], [0, 0, 1, 1], [], []>} : vector<128x256xf32>, vector<256x256xf32>, vector<128x256xf32> -> vector<128x256xf32>
    %c0_9 = arith.constant 0 : index
    %c0_10 = arith.constant 0 : index
    %10 = vector.load %arg5[%c0_9, %c0_10] : memref<1x256xf32, #tpu.memory_space<vmem>>, vector<1x256xf32>
    %11 = vector.broadcast %10 : vector<1x256xf32> to vector<128x256xf32>
    %12 = arith.addf %9, %11 : vector<128x256xf32>
    %cst_11 = arith.constant 0.000000e+00 : f32
    %13 = vector.broadcast %cst_11 : f32 to vector<128x256xf32>
    %14 = arith.maximumf %12, %13 : vector<128x256xf32>
    %c0_12 = arith.constant 0 : index
    %c0_13 = arith.constant 0 : index
    %15 = vector.load %arg6[%c0_12, %c0_13] : memref<256x128xf32, #tpu.memory_space<vmem>>, vector<256x128xf32>
    %cst_14 = arith.constant dense<0.000000e+00> : vector<128x128xf32>
    %16 = tpu.matmul %14, %15, %cst_14 {dimension_numbers = #tpu.dot_dimension_numbers<[1], [0], [0], [1], [0, 0, 1, 1], [], []>} : vector<128x256xf32>, vector<256x128xf32>, vector<128x128xf32> -> vector<128x128xf32>
    %c0_15 = arith.constant 0 : index
    %c0_16 = arith.constant 0 : index
    %17 = vector.load %arg7[%c0_15, %c0_16] : memref<1x128xf32, #tpu.memory_space<vmem>>, vector<1x128xf32>
    %18 = vector.broadcast %17 : vector<1x128xf32> to vector<128x128xf32>
    %19 = arith.addf %16, %18 : vector<128x128xf32>
    %cst_17 = arith.constant 0.000000e+00 : f32
    %20 = vector.broadcast %cst_17 : f32 to vector<128x128xf32>
    %21 = arith.maximumf %19, %20 : vector<128x128xf32>
    %c0_18 = arith.constant 0 : index
    %c0_19 = arith.constant 0 : index
    %22 = vector.load %arg8[%c0_18, %c0_19] : memref<8x128xf32, #tpu.memory_space<vmem>>, vector<8x128xf32>
    %cst_20 = arith.constant dense<0.000000e+00> : vector<8x128xf32>
    %23 = tpu.matmul %22, %21, %cst_20 {dimension_numbers = #tpu.dot_dimension_numbers<[1], [1], [0], [0], [0, 0, 1, 0], [], []>} : vector<8x128xf32>, vector<128x128xf32>, vector<8x128xf32> -> vector<8x128xf32>
    %c0_21 = arith.constant 0 : index
    %c0_22 = arith.constant 0 : index
    %24 = vector.load %arg9[%c0_21, %c0_22] : memref<1x1xf32, #tpu.memory_space<vmem>>, vector<1x1xf32>
    %25 = vector.broadcast %24 : vector<1x1xf32> to vector<8x128xf32>
    %26 = arith.addf %23, %25 : vector<8x128xf32>
    %27 = arith.negf %26 : vector<8x128xf32>
    %28 = math.exp %27 : vector<8x128xf32>
    %cst_23 = arith.constant 1.000000e+00 : f32
    %29 = vector.broadcast %cst_23 : f32 to vector<8x128xf32>
    %30 = arith.addf %29, %28 : vector<8x128xf32>
    %31 = arith.divf %29, %30 : vector<8x128xf32>
    %32 = vector.shape_cast %31 : vector<8x128xf32> to vector<1x8x128xf32>
    %c0_24 = arith.constant 0 : index
    %c0_25 = arith.constant 0 : index
    %c0_26 = arith.constant 0 : index
    %33 = vector.load %arg10[%c0_24, %c0_25, %c0_26] : memref<1x8x128xf32, #tpu.memory_space<vmem>>, vector<1x8x128xf32>
    tpu.vector_store %arg10[%c0_24, %c0_25, %c0_26], %32 {strides = array<i32>} : memref<1x8x128xf32, #tpu.memory_space<vmem>>, vector<1x8x128xf32>,
    return
  }
  func.func @transform_0(%arg0: i32) -> (i32, i32) {
    %c0_i32 = arith.constant 0 : i32
    %c0_i32_0 = arith.constant 0 : i32
    return %arg0, %c0_i32 : i32, i32
  }
  func.func @transform_1(%arg0: i32) -> (i32, i32) {
    %c0_i32 = arith.constant 0 : i32
    %c0_i32_0 = arith.constant 0 : i32
    %c0_i32_1 = arith.constant 0 : i32
    return %c0_i32, %c0_i32_0 : i32, i32
  }
  func.func @transform_2(%arg0: i32) -> (i32, i32) {
    %c0_i32 = arith.constant 0 : i32
    %c0_i32_0 = arith.constant 0 : i32
    %c0_i32_1 = arith.constant 0 : i32
    return %c0_i32, %c0_i32_0 : i32, i32
  }
  func.func @transform_3(%arg0: i32) -> (i32, i32) {
    %c0_i32 = arith.constant 0 : i32
    %c0_i32_0 = arith.constant 0 : i32
    %c0_i32_1 = arith.constant 0 : i32
    return %c0_i32, %c0_i32_0 : i32, i32
  }
  func.func @transform_4(%arg0: i32) -> (i32, i32) {
    %c0_i32 = arith.constant 0 : i32
    %c0_i32_0 = arith.constant 0 : i32
    %c0_i32_1 = arith.constant 0 : i32
    return %c0_i32, %c0_i32_0 : i32, i32
  }
  func.func @transform_5(%arg0: i32) -> (i32, i32) {
    %c0_i32 = arith.constant 0 : i32
    %c0_i32_0 = arith.constant 0 : i32
    %c0_i32_1 = arith.constant 0 : i32
    return %c0_i32, %c0_i32_0 : i32, i32
  }
  func.func @transform_6(%arg0: i32) -> (i32, i32) {
    %c0_i32 = arith.constant 0 : i32
    %c0_i32_0 = arith.constant 0 : i32
    %c0_i32_1 = arith.constant 0 : i32
    return %c0_i32, %c0_i32_0 : i32, i32
  }
  func.func @transform_7(%arg0: i32) -> (i32, i32) {
    %c0_i32 = arith.constant 0 : i32
    %c0_i32_0 = arith.constant 0 : i32
    %c0_i32_1 = arith.constant 0 : i32
    return %c0_i32, %c0_i32_0 : i32, i32
  }
  func.func @transform_8(%arg0: i32) -> (i32, i32) {
    %c0_i32 = arith.constant 0 : i32
    %c0_i32_0 = arith.constant 0 : i32
    %c0_i32_1 = arith.constant 0 : i32
    return %c0_i32, %c0_i32_0 : i32, i32
  }
  func.func @transform_9(%arg0: i32) -> (i32, i32, i32) {
    %c0_i32 = arith.constant 0 : i32
    %c0_i32_0 = arith.constant 0 : i32
    %c0_i32_1 = arith.constant 0 : i32
    return %arg0, %c0_i32, %c0_i32_0 : i32, i32, i32
  }
}

</mosaic_0001>

<bundles_post_ra>
// kernel: tpu_custom_call.1
= control target key start
LH: loop header
LB: loop body
LE: loop exit
PB: predicated region body
PF: predicated region fallthrough
CT: control target
= control target key end

     0   :  { %s2217_s0 = inlined_call_operand.hbm [shape: f32[256,128], index: 0, kind: input, shape index: {}]   ;;  %s2218_s1 = inlined_call_operand.hbm [shape: f32[128,256], index: 1, kind: input, shape index: {}]   ;;  %s2219_s2 = inlined_call_operand.hbm [shape: f32[1,256], index: 2, kind: input, shape index: {}]   ;;  %s2220_s3 = inlined_call_operand.hbm [shape: f32[256,256], index: 3, kind: input, shape index: {}]   ;;  %s2221_s4 = inlined_call_operand.hbm [shape: f32[1,256], index: 4, kind: input, shape index: {}]   ;;  %s2222_s5 = inlined_call_operand.hbm [shape: f32[256,128], index: 5, kind: input, shape index: {}]   ;;  %s2223_s6 = inlined_call_operand.hbm [shape: f32[1,128], index: 6, kind: input, shape index: {}]   ;;  %s2224_s7 = inlined_call_operand.vmem [shape: f32[8,128], index: 7, kind: input, shape index: {}]   ;;  %s2225_s8 = inlined_call_operand.<no memory space> [shape: f32[1,1], index: 8, kind: input, shape index: {}]   ;;  %s2226_s9 = inlined_call_operand.hbm [shape: f32[2,8,128], index: 9, kind: output, shape index: {}]  }
   0x1   :  { %2229 = sst [smem:[#allocation21_spill]] %s2218_s1  ;;  %v14_v0 = vstv %s2225_s8 }
   0x2   :  { %2230 = sst [smem:[#allocation22_spill]] %s2219_s2  ;;  %15 = vst [vmem:[#allocation2] sm:$0x1] %v14_v0 }
   0x3   :  { %2231 = sst [smem:[#allocation23_spill]] %s2220_s3 }
   0x4   :  { %16 = vsyncpa [#allocation4], 0 }
   0x5   :  { %18 = vsyncpa [#allocation4 + $0x1], 0 }
   0x6   :  { %19 = vsyncpa [#allocation7], 0 }
   0x7   :  { %20 = vsyncpa [#allocation10], 0 }
   0x8   :  { %21 = vsyncpa [#allocation13], 0 }
   0x9   :  { %22 = vsyncpa [#allocation5], 0 }
   0xa   :  { %24 = vsyncpa [#allocation5 + $0x1], 0  ;;  %s1900_s11 = smov 0   ;;  %s1902_s12 = smov 0  }
   0xb   :  { %s1904_s13 = smov 0   ;;  %s1906_s14 = smov 0  }
   0xc LB: > { %s2232_s1 = sld [smem:[#allocation21_spill]]  ;;  %s1924_s17 = sadd.s32 4294967295, %s1834_s14   ;;  %s1834_s14 = sphi %s1906_s14, %s2248_s14   ;;  %s1830_s13 = sphi %s1904_s13, %s2247_s13   ;;  %s1826_s12 = sphi %s1902_s12, %s2246_s12   ;;  %s1822_s11 = sphi %s1900_s11, %s2245_s11  }
   0xd   : > { %p1401_p0 = scmp.ge.s32.totalorder %s1834_s14, 1  ;;  %p51_p1 = scmp.eq.s32.totalorder %s1924_s17, 0 }
   0xe   : > { %p255_p2 = scmp.lt.s32.totalorder %s1834_s14, 3  ;;  %s1836_s19 = smov [#allocation6]  }
   0xf   : > { %s268_s20 = sshll.u32 %s1836_s19, 4  ;;  %s2234_s3 = sld [smem:[#allocation23_spill]]  ;;  %s269_s20 = int_to_ptr.vmem [resolvable:$true] %s268_s20 }
  0x10   : > { %p1929_p3 = pnand %p1401_p0, %p255_p2  ;;  %s318_s27 = sshll.u32 %s2222_s5, 4  ;;  %s319_s27 = int_to_ptr.hbm [resolvable:$true] %s318_s27 }
  0x11   : > { %s1837_s28 = smov [#allocation9]   ;;  %s1838_s30 = smov 256  }
  0x12   : > { %s266_s16 = sshll.u32 %s2232_s1, 4  ;;  %p1455_p4 = pneg %p1929_p3  ;;  %s267_s16 = int_to_ptr.hbm [resolvable:$true] %s266_s16 }
  0x13   : > { %s294_s29 = sshll.u32 %s1837_s28, 4  ;;  %s1839_s10 = smov 16   ;;  %s295_s29 = int_to_ptr.vmem [resolvable:$true] %s294_s29 }
  0x14   : > { %p1941_p6 = pnand %p1455_p4, %p51_p1  ;;  %s1840_s8 = smov [#allocation12]  }
  0x15   : > { %s292_s23 = sshll.u32 %s2234_s3, 4  ;;  %s320_s15 = sshll.u32 %s1840_s8, 4  ;;  %s293_s23 = int_to_ptr.hbm [resolvable:$true] %s292_s23  ;;  %s321_s15 = int_to_ptr.vmem [resolvable:$true] %s320_s15 }
  0x16   : > { %1458 = dma.hbm_to_vmem [thread:$0]  (!%p1941_p6), %s267_s16, 4096, %s269_s20, [#allocation7], %s1838_s30, %s1838_s30, %s1839_s10  }
  0x17   : > { %1464 = dma.hbm_to_vmem [thread:$0]  (!%p1941_p6), %s293_s23, 8192, %s295_s29, [#allocation10], %s1838_s30, %s1838_s30, %s1839_s10  }
  0x18   : > { %s2236_s2 = sld [smem:[#allocation22_spill]]  ;;  %s2227_s25 = smov 128  }
  0x19   : > { %s2228_s26 = smov 8   ;;  %s1843_s16 = smov [#allocation8]  }
  0x1a   : > { %1470 = dma.hbm_to_vmem [thread:$0]  (!%p1941_p6), %s319_s27, 4096, %s321_s15, [#allocation13], %s2227_s25, %s2227_s25, %s2228_s26  }
  0x1b   : > { %s283_s20 = sshll.u32 %s1843_s16, 4  ;;  %s307_s29 = sshll.u32 %s2221_s4, 4  ;;  %s284_s20 = int_to_ptr.vmem [resolvable:$true] %s283_s20  ;;  %s308_s29 = int_to_ptr.hbm [resolvable:$true] %s307_s29 }
  0x1c   : > { %s333_s27 = sshll.u32 %s2223_s6, 4  ;;  %s1844_s8 = smov [#allocation11]   ;;  %s334_s27 = int_to_ptr.hbm [resolvable:$true] %s333_s27 }
  0x1d   : > { %s309_s15 = sshll.u32 %s1844_s8, 4  ;;  %s1845_s19 = smov [#allocation14]   ;;  %s310_s15 = int_to_ptr.vmem [resolvable:$true] %s309_s15 }
  0x1e   : > { %s281_s22 = sshll.u32 %s2236_s2, 4  ;;  %s335_s21 = sshll.u32 %s1845_s19, 4  ;;  %s282_s22 = int_to_ptr.hbm [resolvable:$true] %s281_s22  ;;  %s336_s21 = int_to_ptr.vmem [resolvable:$true] %s335_s21 }
  0x1f   : > { %1461 = dma.hbm_to_vmem [thread:$0]  (!%p1941_p6), %s282_s22, 32, %s284_s20, [#allocation7]  }
  0x20   : > { %1467 = dma.hbm_to_vmem [thread:$0]  (!%p1941_p6), %s308_s29, 32, %s310_s15, [#allocation10]  }
  0x21   : > { %1473 = dma.hbm_to_vmem [thread:$0]  (!%p1941_p6), %s334_s27, 16, %s336_s21, [#allocation13]  }
  0x22   : > { %s1400_s22 = sadd.s32 4294967294, %s1834_s14   ;;  %s1974_s16 = sadd.s32 1, %s1834_s14  }
  0x23   : > { %s34_s20 = ssub.s32 %s1834_s14, %s1974_s16  ;;  %s37_s23 = sadd.s32 1, %s1830_s13 }
  0x24   : > { %p35_p7 = scmp.eq.s32.totalorder %s34_s20, 0  ;;  %p44_p8 = scmp.ne.s32.totalorder %s1830_s13, %s1826_s12 }
  0x25   : > { %p45_p9 = scmp.eq.s32.totalorder %s1834_s14, 0  ;;  %p50_p10 = scmp.ne.s32.totalorder %s1826_s12, %s1822_s11 }
  0x26   : > { %s1985_s28 = scalar_select %p35_p7, %s1830_s13, %s37_s23  }
  0x27   : > { %p1987_p11 = por %p45_p9, %p44_p8  ;;  %p1993_p12 = por %p51_p1, %p50_p10 }
  0x28   : > { %p242_p13 = scmp.eq.s32.totalorder %s1924_s17, 1  ;;  %p248_p0 = scmp.eq.s32.totalorder %s1400_s22, 1 }
  0x29   : > { %p1488_p2 = scmp.lt.s32.totalorder %s1834_s14, 2  ;;  %s352_s30 = sand.u32 1, %s1830_s13  }
  0x2a   : > { %p2000_p4 = por %p242_p13, %p44_p8  ;;  %p2004_p6 = por %p248_p0, %p50_p10 }
  0x2b   : > { %s1409_s8 = sshll.u32 %s352_s30, 7  ;;  %s1426_s15 = sshll.u32 %s1834_s14, 7 }
  0x2c   : > { %s361_s20 = scalar_lea.hbm %s2217_s0, %s1426_s15  ;;  %s356_s23 = scalar_lea.vmem [#allocation3], %s1409_s8 }
  0x2d   : > { %s364_s25 = sshll.u32 %s356_s23, 4  ;;  %s362_s26 = sshll.u32 %s361_s20, 4  ;;  %s365_s25 = int_to_ptr.vmem [resolvable:$true] %s364_s25  ;;  %s363_s26 = int_to_ptr.hbm [resolvable:$true] %s362_s26 }
  0x2e   : > { %p2014_p7 = pnand %p1488_p2, %p1987_p11  ;;  %s353_s1 = scalar_lea.sflag [#allocation4], %s352_s30 }
  0x2f   : > { %s1726_s2 = sshra.s32 %s363_s26, 4  ;;  %s1733_s19 = scalar_lea.hbm %s2217_s0, 256  ;;  %s1727_s2 = int_to_ptr.hbm [resolvable:$true] %s1726_s2 }
  0x30   : > { %s1728_s3 = scalar_lea.hbm %s1727_s2, 128  ;;  %p1730_p9 = pneg %p2014_p7 }
  0x31   : > { %p1729_p8 = scmp.ne.s32.totalorder %s1727_s2, %s1728_s3  ;;  %p1734_p11 = scmp.lt.s32.totalorder %s1727_s2, %s2217_s0 }
  0x32   : > { %p1735_p0 = scmp.lt.s32.totalorder %s1733_s19, %s1728_s3 }
  0x33   : > { %p1731_p10 = pnand %p1730_p9, %p1729_p8 }
  0x34   : > { %p1736_p2 = por %p1735_p0, %p1734_p11 }
  0x35   : > { %p1732_p13 = pneg %p1731_p10 }
  0x37   : > { %p1737_p5 = pnand %p1736_p2, %p1732_p13 }
  0x39   : > { %1740 = shalt.err (!%p1737_p5)
}
  0x3a   : > { %s2242_s30 = smov 8   ;;  %s2243_s20 = smov 128  }
  0x3b   : > { %1477 = dma.hbm_to_vmem [thread:$0]  (!%p2014_p7), %s363_s26, 2048, %s365_s25, %s353_s1, %s2243_s20, %s2243_s20, %s2242_s30  }
  0x3c   : > { %376 = sbr.rel (%p1929_p3) target bundleno = 852 (0x354), region = 56  ;;  %s2034_s23 = sand.u32 (!%p1929_p3), 1, %s1826_s12  }
  0x3d   : > { %s1413_s2 = sshll.u32 (!%p1929_p3), %s2034_s23, 7  ;;  %s379_s3 = scalar_lea.sflag (!%p1929_p3), [#allocation4], %s2034_s23 }
  0x3e   : > { %s2038_s8 = scalar_lea.vmem (!%p1929_p3), [#allocation3], %s1413_s2 }
  0x41   : > { %1801 = dma.done.wait (%p1993_p12), %s379_s3, 2048  }
  0x42   : > { %1803 = vsyncadd (%p1993_p12), %s379_s3, 4294965248 }
  0x43   : > { %1805 = dma.done.wait (%p51_p1), [#allocation7], 4128  }
  0x44   : > { %1807 = vsyncadd (%p51_p1), [#allocation7], 4294963168 }
  0x45   : > { %1809 = dma.done.wait (%p51_p1), [#allocation10], 8224  }
  0x46   : > { %1811 = vsyncadd (%p51_p1), [#allocation10], 4294959072 }
  0x47   : > { %1813 = dma.done.wait (%p51_p1), [#allocation13], 4112  }
  0x48   : > { %1815 = vsyncadd (%p51_p1), [#allocation13], 4294963184  ;;  %v495_v1 = vld [vmem:[#allocation6 + $0xf0] sm:$0xff]  ;;  %v493_v2 = vld [vmem:[#allocation6 + $0xe0] sm:$0xff]  ;;  %s1420_s25 = sshll.u32 %s2034_s23, 3  ;;  %s1423_s26 = sshll.u32 %s1924_s17, 3 }
  0x49   : > { %v496_v3 = vld [vmem:[#allocation6 + $0xf8] sm:$0xff]  ;;  %503 = vmatpush.msra.mxu0 %v495_v1  ;;  %v494_v4 = vld [vmem:[#allocation6 + $0xe8] sm:$0xff]  ;;  %v491_v5 = vld [vmem:[#allocation6 + $0xd0] sm:$0xff]  ;;  %s1268_s15 = scalar_lea.hbm %s2226_s9, %s1423_s26  ;;  %s447_s19 = scalar_lea.vmem [#allocation15], %s1420_s25 }
  0x4a   : > { %568 = vmatpush.msra.mxu1 %v496_v3  ;;  %v492_v6 = vld [vmem:[#allocation6 + $0xd8] sm:$0xff]  ;;  %v489_v7 = vld [vmem:[#allocation6 + $0xc0] sm:$0xff]  ;;  %v490_v8 = vld [vmem:[#allocation6 + $0xc8] sm:$0xff]  ;;  %s1270_s21 = sshll.u32 %s447_s19, 4  ;;  %s1272_s29 = sshll.u32 %s1268_s15, 4  ;;  %s1271_s21 = int_to_ptr.vmem [resolvable:$true] %s1270_s21  ;;  %s1273_s29 = int_to_ptr.hbm [resolvable:$true] %s1272_s29 }
  0x4b   : > { %504 = vmatpush.msra.mxu0 %v493_v2  ;;  %v487_v9 = vld [vmem:[#allocation6 + $0xb0] sm:$0xff]  ;;  %v488_v10 = vld [vmem:[#allocation6 + $0xb8] sm:$0xff]  ;;  %v485_v11 = vld [vmem:[#allocation6 + $0xa0] sm:$0xff]  ;;  %s1258_s17 = scalar_lea.sflag [#allocation5], %s2034_s23  ;;  %s1770_s30 = sshra.s32 %s1273_s29, 4  ;;  %s1771_s30 = int_to_ptr.hbm [resolvable:$true] %s1770_s30 }
  0x4c   : > { %569 = vmatpush.msra.mxu1 %v494_v4  ;;  %v486_v12 = vld [vmem:[#allocation6 + $0xa8] sm:$0xff]  ;;  %v483_v13 = vld [vmem:[#allocation6 + $0x90] sm:$0xff]  ;;  %v484_v14 = vld [vmem:[#allocation6 + $0x98] sm:$0xff]  ;;  %s1772_s20 = scalar_lea.hbm %s1771_s30, 8  ;;  %p1777_p12 = scmp.lt.s32.totalorder %s1771_s30, %s2226_s9 }
  0x4d   : > { %505 = vmatpush.msra.mxu0 %v491_v5  ;;  %v481_v15 = vld [vmem:[#allocation6 + $0x80] sm:$0xff]  ;;  %v482_v16 = vld [vmem:[#allocation6 + $0x88] sm:$0xff]  ;;  %v479_v17 = vld [vmem:[#allocation6 + $0x70] sm:$0xff]  ;;  %p1773_p1 = scmp.ne.s32.totalorder %s1771_s30, %s1772_s20 }
  0x4e   : > { %570 = vmatpush.msra.mxu1 %v492_v6  ;;  %v480_v18 = vld [vmem:[#allocation6 + $0x78] sm:$0xff]  ;;  %v477_v19 = vld [vmem:[#allocation6 + $0x60] sm:$0xff]  ;;  %v478_v20 = vld [vmem:[#allocation6 + $0x68] sm:$0xff] }
  0x4f   : > { %506 = vmatpush.msra.mxu0 %v489_v7  ;;  %v475_v21 = vld [vmem:[#allocation6 + $0x50] sm:$0xff]  ;;  %v476_v22 = vld [vmem:[#allocation6 + $0x58] sm:$0xff]  ;;  %v473_v23 = vld [vmem:[#allocation6 + $0x40] sm:$0xff]  ;;  %p1774_p3 = pnand %p1773_p1, %p2000_p4 }
  0x50   : > { %571 = vmatpush.msra.mxu1 %v490_v8  ;;  %v474_v24 = vld [vmem:[#allocation6 + $0x48] sm:$0xff]  ;;  %v471_v25 = vld [vmem:[#allocation6 + $0x30] sm:$0xff]  ;;  %v472_v26 = vld [vmem:[#allocation6 + $0x38] sm:$0xff] }
  0x51   : > { %507 = vmatpush.msra.mxu0 %v487_v9  ;;  %v469_v27 = vld [vmem:[#allocation6 + $0x20] sm:$0xff]  ;;  %v470_v28 = vld [vmem:[#allocation6 + $0x28] sm:$0xff]  ;;  %v467_v29 = vld [vmem:[#allocation6 + $0x10] sm:$0xff]  ;;  %p1775_p5 = pneg %p1774_p3 }
  0x52   : > { %572 = vmatpush.msra.mxu1 %v488_v10  ;;  %v468_v30 = vld [vmem:[#allocation6 + $0x18] sm:$0xff]  ;;  %v465_v31 = vld [vmem:[#allocation6] sm:$0xff]  ;;  %v466_v32 = vld [vmem:[#allocation6 + $0x8] sm:$0xff] }
  0x53   : > { %508 = vmatpush.msra.mxu0 %v485_v11  ;;  %v449_v33 = vld [vmem:[%s2038_s8] sm:$0xff]  ;;  %v450_v34 = vld [vmem:[%s2038_s8 + $0x8] sm:$0xff]  ;;  %v451_v35 = vld [vmem:[%s2038_s8 + $0x10] sm:$0xff] }
  0x54   : > { %573 = vmatpush.msra.mxu1 %v486_v12  ;;  %v452_v36 = vld [vmem:[%s2038_s8 + $0x18] sm:$0xff]  ;;  %v453_v37 = vld [vmem:[%s2038_s8 + $0x20] sm:$0xff]  ;;  %v454_v38 = vld [vmem:[%s2038_s8 + $0x28] sm:$0xff] }
  0x55   : > { %509 = vmatpush.msra.mxu0 %v483_v13  ;;  %v696_v39 = vld [vmem:[#allocation9 + $0xf8] sm:$0xff]  ;;  %v455_v41 = vld [vmem:[%s2038_s8 + $0x30] sm:$0xff]  ;;  %v693_v50 = vld [vmem:[#allocation9 + $0xe0] sm:$0xff] }
  0x56   : > { %574 = vmatpush.msra.mxu1 %v484_v14  ;;  %v728_v40 = vld [vmem:[#allocation9 + $0x1f8] sm:$0xff]  ;;  %v694_v42 = vld [vmem:[#allocation9 + $0xe8] sm:$0xff]  ;;  %v695_v48 = vld [vmem:[#allocation9 + $0xf0] sm:$0xff] }
  0x57   : > { %510 = vmatpush.msra.mxu0 %v481_v15  ;;  %v726_v43 = vld [vmem:[#allocation9 + $0x1e8] sm:$0xff]  ;;  %v456_v44 = vld [vmem:[%s2038_s8 + $0x38] sm:$0xff]  ;;  %v457_v47 = vld [vmem:[%s2038_s8 + $0x40] sm:$0xff]  ;;  %735 = vmatpush.msra.mxu2 %v695_v48 }
  0x58   : > { %575 = vmatpush.msra.mxu1 %v482_v16  ;;  %v692_v45 = vld [vmem:[#allocation9 + $0xd8] sm:$0xff]  ;;  %v690_v49 = vld [vmem:[#allocation9 + $0xc8] sm:$0xff]  ;;  %v727_v51 = vld [vmem:[#allocation9 + $0x1f0] sm:$0xff] }
  0x59   : > { %511 = vmatpush.msra.mxu0 %v479_v17  ;;  %v724_v46 = vld [vmem:[#allocation9 + $0x1d8] sm:$0xff]  ;;  %v722_v52 = vld [vmem:[#allocation9 + $0x1c8] sm:$0xff]  ;;  %800 = vmatpush.msra.mxu3 %v727_v51  ;;  %v691_v53 = vld [vmem:[#allocation9 + $0xd0] sm:$0xff] }
  0x5a   : > { %576 = vmatpush.msra.mxu1 %v480_v18  ;;  %v725_v54 = vld [vmem:[#allocation9 + $0x1e0] sm:$0xff]  ;;  %736 = vmatpush.msra.mxu2 %v693_v50  ;;  %v723_v57 = vld [vmem:[#allocation9 + $0x1d0] sm:$0xff]  ;;  %v688_v60 = vld [vmem:[#allocation9 + $0xb8] sm:$0xff] }
  0x5b   : > { %512 = vmatpush.msra.mxu0 %v477_v19  ;;  %801 = vmatpush.msra.mxu3 %v725_v54  ;;  %v458_v55 = vld [vmem:[%s2038_s8 + $0x48] sm:$0xff]  ;;  %v687_v58 = vld [vmem:[#allocation9 + $0xb0] sm:$0xff]  ;;  %v720_v0 = vld [vmem:[#allocation9 + $0x1b8] sm:$0xff] }
  0x5c   : > { %577 = vmatpush.msra.mxu1 %v478_v20  ;;  %737 = vmatpush.msra.mxu2 %v691_v53  ;;  %v689_v56 = vld [vmem:[#allocation9 + $0xc0] sm:$0xff]  ;;  %v719_v62 = vld [vmem:[#allocation9 + $0x1b0] sm:$0xff]  ;;  %v686_v63 = vld [vmem:[#allocation9 + $0xa8] sm:$0xff] }
  0x5d   : > { %513 = vmatpush.msra.mxu0 %v475_v21  ;;  %802 = vmatpush.msra.mxu3 %v723_v57  ;;  %v721_v59 = vld [vmem:[#allocation9 + $0x1c0] sm:$0xff]  ;;  %v684_v1 = vld [vmem:[#allocation9 + $0x98] sm:$0xff]  ;;  %v683_v2 = vld [vmem:[#allocation9 + $0x90] sm:$0xff] }
  0x5e   : > { %578 = vmatpush.msra.mxu1 %v476_v22  ;;  %738 = vmatpush.msra.mxu2 %v689_v56  ;;  %v685_v61 = vld [vmem:[#allocation9 + $0xa0] sm:$0xff]  ;;  %v718_v4 = vld [vmem:[#allocation9 + $0x1a8] sm:$0xff]  ;;  %v715_v7 = vld [vmem:[#allocation9 + $0x190] sm:$0xff] }
  0x5f   : > { %514 = vmatpush.msra.mxu0 %v473_v23  ;;  %803 = vmatpush.msra.mxu3 %v721_v59  ;;  %v717_v3 = vld [vmem:[#allocation9 + $0x1a0] sm:$0xff]  ;;  %v459_v5 = vld [vmem:[%s2038_s8 + $0x50] sm:$0xff]  ;;  %v716_v9 = vld [vmem:[#allocation9 + $0x198] sm:$0xff] }
  0x60   : > { %579 = vmatpush.msra.mxu1 %v474_v24  ;;  %739 = vmatpush.msra.mxu2 %v687_v58  ;;  %v681_v6 = vld [vmem:[#allocation9 + $0x80] sm:$0xff]  ;;  %v682_v8 = vld [vmem:[#allocation9 + $0x88] sm:$0xff]  ;;  %v679_v10 = vld [vmem:[#allocation9 + $0x70] sm:$0xff] }
  0x61   : > { %515 = vmatpush.msra.mxu0 %v471_v25  ;;  %804 = vmatpush.msra.mxu3 %v719_v62  ;;  %v713_v11 = vld [vmem:[#allocation9 + $0x180] sm:$0xff]  ;;  %v680_v12 = vld [vmem:[#allocation9 + $0x78] sm:$0xff]  ;;  %v714_v13 = vld [vmem:[#allocation9 + $0x188] sm:$0xff] }
  0x62   : > { %580 = vmatpush.msra.mxu1 %v472_v26  ;;  %740 = vmatpush.msra.mxu2 %v685_v61  ;;  %v677_v14 = vld [vmem:[#allocation9 + $0x60] sm:$0xff]  ;;  %v711_v15 = vld [vmem:[#allocation9 + $0x170] sm:$0xff]  ;;  %v678_v16 = vld [vmem:[#allocation9 + $0x68] sm:$0xff] }
  0x63   : > { %516 = vmatpush.msra.mxu0 %v469_v27  ;;  %805 = vmatpush.msra.mxu3 %v717_v3  ;;  %v712_v17 = vld [vmem:[#allocation9 + $0x178] sm:$0xff]  ;;  %v675_v18 = vld [vmem:[#allocation9 + $0x50] sm:$0xff]  ;;  %v709_v19 = vld [vmem:[#allocation9 + $0x160] sm:$0xff] }
  0x64   : > { %581 = vmatpush.msra.mxu1 %v470_v28  ;;  %741 = vmatpush.msra.mxu2 %v683_v2  ;;  %v460_v20 = vld [vmem:[%s2038_s8 + $0x58] sm:$0xff]  ;;  %v710_v22 = vld [vmem:[#allocation9 + $0x168] sm:$0xff]  ;;  %v673_v23 = vld [vmem:[#allocation9 + $0x40] sm:$0xff] }
  0x65   : > { %517 = vmatpush.msra.mxu0 %v467_v29  ;;  %806 = vmatpush.msra.mxu3 %v715_v7  ;;  %v676_v21 = vld [vmem:[#allocation9 + $0x58] sm:$0xff]  ;;  %v707_v24 = vld [vmem:[#allocation9 + $0x150] sm:$0xff]  ;;  %v674_v25 = vld [vmem:[#allocation9 + $0x48] sm:$0xff] }
  0x66   : > { %582 = vmatpush.msra.mxu1 %v468_v30  ;;  %742 = vmatpush.msra.mxu2 %v681_v6  ;;  %v708_v26 = vld [vmem:[#allocation9 + $0x158] sm:$0xff]  ;;  %v671_v27 = vld [vmem:[#allocation9 + $0x30] sm:$0xff]  ;;  %v705_v28 = vld [vmem:[#allocation9 + $0x140] sm:$0xff] }
  0x67   : > { %518 = vmatpush.msra.mxu0 %v465_v31  ;;  %807 = vmatpush.msra.mxu3 %v713_v11  ;;  %v672_v29 = vld [vmem:[#allocation9 + $0x38] sm:$0xff]  ;;  %v706_v30 = vld [vmem:[#allocation9 + $0x148] sm:$0xff]  ;;  %v669_v31 = vld [vmem:[#allocation9 + $0x20] sm:$0xff] }
  0x68   : > { %583 = vmatpush.msra.mxu1 %v466_v32  ;;  %519 = vmatmul.f32.vlgmr.msra.gmra.mxu0 %v449_v33  ;;  %v703_v32 = vld [vmem:[#allocation9 + $0x130] sm:$0xff] }
  0x69   : > { %584 = vmatmul.f32.vlgmr.msra.gmra.mxu1 %v449_v33  ;;  %865 = vmatpush.msrb.mxu0 %v696_v39  ;;  %v670_v33 = vld [vmem:[#allocation9 + $0x28] sm:$0xff]  ;;  %v464_v48 = vld [vmem:[%s2038_s8 + $0x78] sm:$0xff] }
  0x6a   : > { %930 = vmatpush.msrb.mxu1 %v728_v40  ;;  %743 = vmatpush.msra.mxu2 %v679_v10  ;;  %v702_v39 = vld [vmem:[#allocation9 + $0x128] sm:$0xff]  ;;  %v665_v40 = vld [vmem:[#allocation9] sm:$0xff] }
  0x6b   : > { %866 = vmatpush.msrb.mxu0 %v694_v42  ;;  %808 = vmatpush.msra.mxu3 %v711_v15  ;;  %v666_v42 = vld [vmem:[#allocation9 + $0x8] sm:$0xff] }
  0x6c   : > { %931 = vmatpush.msrb.mxu1 %v726_v43  ;;  %744 = vmatpush.msra.mxu2 %v677_v14  ;;  %v700_v43 = vld [vmem:[#allocation9 + $0x118] sm:$0xff] }
  0x6d   : > { %867 = vmatpush.msrb.mxu0 %v692_v45  ;;  %809 = vmatpush.msra.mxu3 %v709_v19  ;;  %v698_v45 = vld [vmem:[#allocation9 + $0x108] sm:$0xff] }
  0x6e   : > { %932 = vmatpush.msrb.mxu1 %v724_v46  ;;  %745 = vmatpush.msra.mxu2 %v675_v18  ;;  %v462_v46 = vld [vmem:[%s2038_s8 + $0x68] sm:$0xff] }
  0x6f   : > { %868 = vmatpush.msrb.mxu0 %v690_v49  ;;  %810 = vmatpush.msra.mxu3 %v707_v24  ;;  %v497_v49 = vld [vmem:[#allocation8] sm:$0x3] }
  0x70   : > { %522 = vmatmul.f32.gmra.mxu0 %v450_v34  ;;  %933 = vmatpush.msrb.mxu1 %v722_v52  ;;  %v2072_v50 = vperm.slane %v497_v49, 0  ;;  %v2074_v51 = vperm.slane %v497_v49, 1 }
  0x71   : > { %587 = vmatmul.f32.gmra.mxu1 %v450_v34  ;;  %869 = vmatpush.msrb.mxu0 %v688_v60  ;;  %v461_v34 = vld [vmem:[%s2038_s8 + $0x60] sm:$0xff] }
  0x72   : > { %934 = vmatpush.msrb.mxu1 %v720_v0  ;;  %746 = vmatpush.msra.mxu2 %v673_v23 }
  0x73   : > { %870 = vmatpush.msrb.mxu0 %v686_v63  ;;  %811 = vmatpush.msra.mxu3 %v705_v28 }
  0x74   : > { %935 = vmatpush.msrb.mxu1 %v718_v4  ;;  %747 = vmatpush.msra.mxu2 %v671_v27 }
  0x75   : > { %871 = vmatpush.msrb.mxu0 %v684_v1  ;;  %812 = vmatpush.msra.mxu3 %v703_v32 }
  0x76   : > { %936 = vmatpush.msrb.mxu1 %v716_v9  ;;  %748 = vmatpush.msra.mxu2 %v669_v31  ;;  %v1058_v31 = vld [vmem:[#allocation12 + $0xf8] sm:$0xff] }
  0x77   : > { %872 = vmatpush.msrb.mxu0 %v682_v8 }
  0x78   : > { %525 = vmatmul.f32.gmra.mxu0 %v451_v35  ;;  %937 = vmatpush.msrb.mxu1 %v714_v13 }
  0x79   : > { %590 = vmatmul.f32.gmra.mxu1 %v451_v35  ;;  %873 = vmatpush.msrb.mxu0 %v680_v12  ;;  %v704_v35 = vld [vmem:[#allocation9 + $0x138] sm:$0xff] }
  0x7a   : > { %938 = vmatpush.msrb.mxu1 %v712_v17 }
  0x7b   : > { %874 = vmatpush.msrb.mxu0 %v678_v16 }
  0x7c   : > { %939 = vmatpush.msrb.mxu1 %v710_v22 }
  0x7d   : > { %875 = vmatpush.msrb.mxu0 %v676_v21 }
  0x7e   : > { %940 = vmatpush.msrb.mxu1 %v708_v26 }
  0x7f   : > { %876 = vmatpush.msrb.mxu0 %v674_v25 }
  0x80   : > { %528 = vmatmul.f32.gmra.mxu0 %v452_v36  ;;  %941 = vmatpush.msrb.mxu1 %v706_v30  ;;  %v1042_v30 = vld [vmem:[#allocation12 + $0x78] sm:$0xff] }
  0x81   : > { %593 = vmatmul.f32.gmra.mxu1 %v452_v36  ;;  %877 = vmatpush.msrb.mxu0 %v672_v29  ;;  %v667_v36 = vld [vmem:[#allocation9 + $0x10] sm:$0xff] }
  0x82   : > { %942 = vmatpush.msrb.mxu1 %v704_v35  ;;  %749 = vmatpush.msra.mxu2 %v667_v36 }
  0x83   : > { %878 = vmatpush.msrb.mxu0 %v670_v33 }
  0x84   : > { %943 = vmatpush.msrb.mxu1 %v702_v39  ;;  %750 = vmatpush.msra.mxu2 %v665_v40  ;;  %v1057_v39 = vld [vmem:[#allocation12 + $0xf0] sm:$0xff] }
  0x86   : > { %944 = vmatpush.msrb.mxu1 %v700_v43  ;;  %1063 = vmatpush.msrb.mxu2 %v1042_v30 }
  0x88   : > { %531 = vmatmul.f32.gmra.mxu0 %v453_v37  ;;  %945 = vmatpush.msrb.mxu1 %v698_v45 }
  0x89   : > { %596 = vmatmul.f32.gmra.mxu1 %v453_v37  ;;  %v701_v37 = vld [vmem:[#allocation9 + $0x120] sm:$0xff] }
  0x8a   : > { %813 = vmatpush.msra.mxu3 %v701_v37 }
  0x90   : > { %534 = vmatmul.f32.gmra.mxu0 %v454_v38 }
  0x91   : > { %599 = vmatmul.f32.gmra.mxu1 %v454_v38  ;;  %v668_v38 = vld [vmem:[#allocation9 + $0x18] sm:$0xff] }
  0x92   : > { %879 = vmatpush.msrb.mxu0 %v668_v38  ;;  %v1041_v38 = vld [vmem:[#allocation12 + $0x70] sm:$0xff] }
  0x93   : > { %1064 = vmatpush.msrb.mxu2 %v1041_v38  ;;  %v1043_v38 = vld [vmem:[#allocation12 + $0x80] sm:$0xff] }
  0x94   : > { %880 = vmatpush.msrb.mxu0 %v666_v42 }
  0x98   : > { %537 = vmatmul.f32.gmra.mxu0 %v455_v41 }
  0x99   : > { %602 = vmatmul.f32.gmra.mxu1 %v455_v41  ;;  %v699_v41 = vld [vmem:[#allocation9 + $0x110] sm:$0xff] }
  0x9a   : > { %814 = vmatpush.msra.mxu3 %v699_v41 }
  0xa0   : > { %540 = vmatmul.f32.gmra.mxu0 %v456_v44 }
  0xa1   : > { %605 = vmatmul.f32.gmra.mxu1 %v456_v44  ;;  %v697_v44 = vld [vmem:[#allocation9 + $0x100] sm:$0xff] }
  0xa2   : > { %815 = vmatpush.msra.mxu3 %v697_v44 }
  0xa4   : > { %1128 = vmatpush.msrb.mxu3 %v1058_v31 }
  0xa6   : > { %1129 = vmatpush.msrb.mxu3 %v1057_v39  ;;  %v1029_v39 = vld [vmem:[#allocation12 + $0x10] sm:$0xff] }
  0xa8   : > { %543 = vmatmul.f32.gmra.mxu0 %v457_v47 }
  0xa9   : > { %608 = vmatmul.f32.gmra.mxu1 %v457_v47  ;;  %v463_v47 = vld [vmem:[%s2038_s8 + $0x70] sm:$0xff]  ;;  %s1776_s8 = scalar_lea.hbm %s2226_s9, 16 }
  0xaa   : > { %p1778_p7 = scmp.lt.s32.totalorder %s1776_s8, %s1772_s20 }
  0xac   : > { %p1779_p8 = por %p1778_p7, %p1777_p12 }
  0xae   : > { %p1780_p9 = pnand %p1779_p8, %p1775_p5 }
  0xb0   : > { %546 = vmatmul.f32.gmra.mxu0 %v458_v55 }
  0xb1   : > { %611 = vmatmul.f32.gmra.mxu1 %v458_v55 }
  0xb8   : > { %549 = vmatmul.f32.gmra.mxu0 %v459_v5 }
  0xb9   : > { %614 = vmatmul.f32.gmra.mxu1 %v459_v5 }
  0xc0   : > { %552 = vmatmul.f32.gmra.mxu0 %v460_v20 }
  0xc1   : > { %617 = vmatmul.f32.gmra.mxu1 %v460_v20 }
  0xc8   : > { %555 = vmatmul.f32.gmra.mxu0 %v461_v34 }
  0xc9   : > { %620 = vmatmul.f32.gmra.mxu1 %v461_v34 }
  0xd0   : > { %558 = vmatmul.f32.gmra.mxu0 %v462_v46 }
  0xd1   : > { %623 = vmatmul.f32.gmra.mxu1 %v462_v46  ;;  %v1040_v46 = vld [vmem:[#allocation12 + $0x68] sm:$0xff] }
  0xd2   : > { %1065 = vmatpush.msrb.mxu2 %v1040_v46 }
  0xd8   : > { %561 = vmatmul.f32.gmra.mxu0 %v463_v47 }
  0xd9   : > { %626 = vmatmul.f32.gmra.mxu1 %v463_v47  ;;  %v1056_v47 = vld [vmem:[#allocation12 + $0xe8] sm:$0xff] }
  0xda   : > { %1130 = vmatpush.msrb.mxu3 %v1056_v47 }
  0xe0   : > { %564 = vmatmul.f32.gmra.mxu0 %v464_v48 }
  0xe1   : > { %629 = vmatmul.f32.gmra.mxu1 %v464_v48 }
  0xe5   : > { %v520_v52 = vpop.f32.mrf.mxu0 }
  0xe6   : > { %v585_v53 = vpop.f32.mrf.mxu1  ;;  %v521_v54 = vadd.f32 %v520_v52, %v2072_v50 }
  0xe7   : > { %v586_v55 = vadd.f32 %v585_v53, %v2074_v51 }
  0xe8   : > { %v633_v56 = vmax.f32 %v521_v54, 0.0 }
  0xe9   : > { %v634_v57 = vmax.f32 %v586_v55, 0.0 }
  0xea   : > { %751 = vmatmul.f32.vlgmr.msra.gmra.mxu2 %v633_v56  ;;  %881 = vmatmul.f32.vlgmr.msrb.gmra.mxu0 %v633_v56  ;;  %v1039_v56 = vld [vmem:[#allocation12 + $0x60] sm:$0xff] }
  0xeb   : > { %816 = vmatmul.f32.vlgmr.msra.gmra.mxu3 %v634_v57  ;;  %946 = vmatmul.f32.vlgmr.msrb.gmra.mxu1 %v634_v57  ;;  %v1055_v57 = vld [vmem:[#allocation12 + $0xe0] sm:$0xff] }
  0xec   : > { %1066 = vmatpush.msrb.mxu2 %v1039_v56  ;;  %1131 = vmatpush.msrb.mxu3 %v1055_v57  ;;  %v729_v56 = vld [vmem:[#allocation11] sm:$0x3] }
  0xed   : > { %v523_v58 = vpop.f32.mrf.mxu0  ;;  %v2108_v57 = vperm.slane %v729_v56, 1 }
  0xee   : > { %v588_v59 = vpop.f32.mrf.mxu1  ;;  %v524_v60 = vadd.f32 %v523_v58, %v2072_v50 }
  0xef   : > { %v589_v61 = vadd.f32 %v588_v59, %v2074_v51 }
  0xf0   : > { %v635_v62 = vmax.f32 %v524_v60, 0.0 }
  0xf1   : > { %v636_v63 = vmax.f32 %v589_v61, 0.0 }
  0xf2   : > { %754 = vmatmul.f32.gmra.mxu2 %v635_v62  ;;  %884 = vmatmul.f32.gmra.mxu0 %v635_v62  ;;  %v1054_v62 = vld [vmem:[#allocation12 + $0xd8] sm:$0xff] }
  0xf3   : > { %819 = vmatmul.f32.gmra.mxu3 %v636_v63  ;;  %949 = vmatmul.f32.gmra.mxu1 %v636_v63 }
  0xf4   : > { %1132 = vmatpush.msrb.mxu3 %v1054_v62  ;;  %v2111_v62 = vperm.slane %v729_v56, 0 }
  0xf5   : > { %v526_v0 = vpop.f32.mrf.mxu0 }
  0xf6   : > { %v591_v1 = vpop.f32.mrf.mxu1  ;;  %v527_v2 = vadd.f32 %v526_v0, %v2072_v50 }
  0xf7   : > { %v592_v3 = vadd.f32 %v591_v1, %v2074_v51  ;;  %v1038_v1 = vld [vmem:[#allocation12 + $0x58] sm:$0xff] }
  0xf8   : > { %v637_v4 = vmax.f32 %v527_v2, 0.0  ;;  %v1053_v2 = vld [vmem:[#allocation12 + $0xd0] sm:$0xff]  ;;  %1067 = vmatpush.msrb.mxu2 %v1038_v1 }
  0xf9   : > { %v638_v5 = vmax.f32 %v592_v3, 0.0  ;;  %1133 = vmatpush.msrb.mxu3 %v1053_v2  ;;  %v1052_v3 = vld [vmem:[#allocation12 + $0xc8] sm:$0xff] }
  0xfa   : > { %757 = vmatmul.f32.gmra.mxu2 %v637_v4  ;;  %887 = vmatmul.f32.gmra.mxu0 %v637_v4  ;;  %v1051_v4 = vld [vmem:[#allocation12 + $0xc0] sm:$0xff] }
  0xfb   : > { %822 = vmatmul.f32.gmra.mxu3 %v638_v5  ;;  %952 = vmatmul.f32.gmra.mxu1 %v638_v5 }
  0xfc   : > { %1134 = vmatpush.msrb.mxu3 %v1052_v3 }
  0xfd   : > { %v529_v6 = vpop.f32.mrf.mxu0 }
  0xfe   : > { %v594_v7 = vpop.f32.mrf.mxu1  ;;  %v530_v8 = vadd.f32 %v529_v6, %v2072_v50  ;;  %1135 = vmatpush.msrb.mxu3 %v1051_v4 }
  0xff   : > { %v595_v9 = vadd.f32 %v594_v7, %v2074_v51 }
 0x100   : > { %v639_v10 = vmax.f32 %v530_v8, 0.0 }
 0x101   : > { %v640_v11 = vmax.f32 %v595_v9, 0.0  ;;  %v1037_v9 = vld [vmem:[#allocation12 + $0x50] sm:$0xff] }
 0x102   : > { %760 = vmatmul.f32.gmra.mxu2 %v639_v10  ;;  %890 = vmatmul.f32.gmra.mxu0 %v639_v10  ;;  %v1050_v10 = vld [vmem:[#allocation12 + $0xb8] sm:$0xff] }
 0x103   : > { %825 = vmatmul.f32.gmra.mxu3 %v640_v11  ;;  %955 = vmatmul.f32.gmra.mxu1 %v640_v11 }
 0x104   : > { %1068 = vmatpush.msrb.mxu2 %v1037_v9  ;;  %1136 = vmatpush.msrb.mxu3 %v1050_v10 }
 0x105   : > { %v532_v12 = vpop.f32.mrf.mxu0 }
 0x106   : > { %v597_v13 = vpop.f32.mrf.mxu1  ;;  %v533_v14 = vadd.f32 %v532_v12, %v2072_v50 }
 0x107   : > { %v598_v15 = vadd.f32 %v597_v13, %v2074_v51  ;;  %v1036_v13 = vld [vmem:[#allocation12 + $0x48] sm:$0xff] }
 0x108   : > { %v641_v16 = vmax.f32 %v533_v14, 0.0  ;;  %1069 = vmatpush.msrb.mxu2 %v1036_v13  ;;  %v1049_v14 = vld [vmem:[#allocation12 + $0xb0] sm:$0xff] }
 0x109   : > { %v642_v17 = vmax.f32 %v598_v15, 0.0  ;;  %v1035_v15 = vld [vmem:[#allocation12 + $0x40] sm:$0xff]  ;;  %1137 = vmatpush.msrb.mxu3 %v1049_v14 }
 0x10a   : > { %763 = vmatmul.f32.gmra.mxu2 %v641_v16  ;;  %893 = vmatmul.f32.gmra.mxu0 %v641_v16  ;;  %v1048_v16 = vld [vmem:[#allocation12 + $0xa8] sm:$0xff] }
 0x10b   : > { %828 = vmatmul.f32.gmra.mxu3 %v642_v17  ;;  %958 = vmatmul.f32.gmra.mxu1 %v642_v17  ;;  %v1034_v17 = vld [vmem:[#allocation12 + $0x38] sm:$0xff] }
 0x10c   : > { %1070 = vmatpush.msrb.mxu2 %v1035_v15  ;;  %1138 = vmatpush.msrb.mxu3 %v1048_v16 }
 0x10d   : > { %v535_v18 = vpop.f32.mrf.mxu0 }
 0x10e   : > { %v600_v19 = vpop.f32.mrf.mxu1  ;;  %v536_v20 = vadd.f32 %v535_v18, %v2072_v50  ;;  %1071 = vmatpush.msrb.mxu2 %v1034_v17 }
 0x10f   : > { %v601_v21 = vadd.f32 %v600_v19, %v2074_v51 }
 0x110   : > { %v643_v22 = vmax.f32 %v536_v20, 0.0  ;;  %v1047_v20 = vld [vmem:[#allocation12 + $0xa0] sm:$0xff] }
 0x111   : > { %v644_v23 = vmax.f32 %v601_v21, 0.0  ;;  %1139 = vmatpush.msrb.mxu3 %v1047_v20 }
 0x112   : > { %766 = vmatmul.f32.gmra.mxu2 %v643_v22  ;;  %896 = vmatmul.f32.gmra.mxu0 %v643_v22 }
 0x113   : > { %831 = vmatmul.f32.gmra.mxu3 %v644_v23  ;;  %961 = vmatmul.f32.gmra.mxu1 %v644_v23  ;;  %v1033_v23 = vld [vmem:[#allocation12 + $0x30] sm:$0xff] }
 0x114   : > { %1072 = vmatpush.msrb.mxu2 %v1033_v23 }
 0x115   : > { %v538_v24 = vpop.f32.mrf.mxu0 }
 0x116   : > { %v603_v25 = vpop.f32.mrf.mxu1  ;;  %v539_v26 = vadd.f32 %v538_v24, %v2072_v50 }
 0x117   : > { %v604_v27 = vadd.f32 %v603_v25, %v2074_v51 }
 0x118   : > { %v645_v28 = vmax.f32 %v539_v26, 0.0  ;;  %v1046_v26 = vld [vmem:[#allocation12 + $0x98] sm:$0xff] }
 0x119   : > { %v646_v29 = vmax.f32 %v604_v27, 0.0  ;;  %v1032_v27 = vld [vmem:[#allocation12 + $0x28] sm:$0xff]  ;;  %1140 = vmatpush.msrb.mxu3 %v1046_v26 }
 0x11a   : > { %769 = vmatmul.f32.gmra.mxu2 %v645_v28  ;;  %899 = vmatmul.f32.gmra.mxu0 %v645_v28  ;;  %v1045_v28 = vld [vmem:[#allocation12 + $0x90] sm:$0xff] }
 0x11b   : > { %834 = vmatmul.f32.gmra.mxu3 %v646_v29  ;;  %964 = vmatmul.f32.gmra.mxu1 %v646_v29  ;;  %v1031_v29 = vld [vmem:[#allocation12 + $0x20] sm:$0xff] }
 0x11c   : > { %1073 = vmatpush.msrb.mxu2 %v1032_v27  ;;  %1141 = vmatpush.msrb.mxu3 %v1045_v28 }
 0x11d   : > { %v541_v32 = vpop.f32.mrf.mxu0 }
 0x11e   : > { %v606_v33 = vpop.f32.mrf.mxu1  ;;  %v542_v34 = vadd.f32 %v541_v32, %v2072_v50  ;;  %v1044_v32 = vld [vmem:[#allocation12 + $0x88] sm:$0xff]  ;;  %1074 = vmatpush.msrb.mxu2 %v1031_v29 }
 0x11f   : > { %v607_v35 = vadd.f32 %v606_v33, %v2074_v51  ;;  %v1030_v33 = vld [vmem:[#allocation12 + $0x18] sm:$0xff]  ;;  %1142 = vmatpush.msrb.mxu3 %v1044_v32 }
 0x120   : > { %v647_v36 = vmax.f32 %v542_v34, 0.0  ;;  %1075 = vmatpush.msrb.mxu2 %v1030_v33 }
 0x121   : > { %v648_v37 = vmax.f32 %v607_v35, 0.0  ;;  %1143 = vmatpush.msrb.mxu3 %v1043_v38 }
 0x122   : > { %772 = vmatmul.f32.gmra.mxu2 %v647_v36  ;;  %902 = vmatmul.f32.gmra.mxu0 %v647_v36 }
 0x123   : > { %837 = vmatmul.f32.gmra.mxu3 %v648_v37  ;;  %967 = vmatmul.f32.gmra.mxu1 %v648_v37 }
 0x124   : > { %1076 = vmatpush.msrb.mxu2 %v1029_v39 }
 0x125   : > { %v544_v40 = vpop.f32.mrf.mxu0 }
 0x126   : > { %v609_v41 = vpop.f32.mrf.mxu1  ;;  %v545_v42 = vadd.f32 %v544_v40, %v2072_v50  ;;  %v1028_v40 = vld [vmem:[#allocation12 + $0x8] sm:$0xff] }
 0x127   : > { %v610_v43 = vadd.f32 %v609_v41, %v2074_v51  ;;  %1077 = vmatpush.msrb.mxu2 %v1028_v40 }
 0x128   : > { %v649_v45 = vmax.f32 %v545_v42, 0.0 }
 0x129   : > { %v650_v44 = vmax.f32 %v610_v43, 0.0  ;;  %v1027_v43 = vld [vmem:[#allocation12] sm:$0xff] }
 0x12a   : > { %775 = vmatmul.f32.gmra.mxu2 %v649_v45  ;;  %905 = vmatmul.f32.gmra.mxu0 %v649_v45 }
 0x12b   : > { %840 = vmatmul.f32.gmra.mxu3 %v650_v44  ;;  %970 = vmatmul.f32.gmra.mxu1 %v650_v44 }
 0x12c   : > { %1078 = vmatpush.msrb.mxu2 %v1027_v43 }
 0x12d   : > { %v547_v48 = vpop.f32.mrf.mxu0 }
 0x12e   : > { %v612_v49 = vpop.f32.mrf.mxu1  ;;  %v548_v52 = vadd.f32 %v547_v48, %v2072_v50 }
 0x12f   : > { %v613_v53 = vadd.f32 %v612_v49, %v2074_v51 }
 0x130   : > { %v651_v54 = vmax.f32 %v548_v52, 0.0 }
 0x131   : > { %v652_v55 = vmax.f32 %v613_v53, 0.0 }
 0x132   : > { %778 = vmatmul.f32.gmra.mxu2 %v651_v54  ;;  %908 = vmatmul.f32.gmra.mxu0 %v651_v54 }
 0x133   : > { %843 = vmatmul.f32.gmra.mxu3 %v652_v55  ;;  %973 = vmatmul.f32.gmra.mxu1 %v652_v55 }
 0x135   : > { %v550_v58 = vpop.f32.mrf.mxu0 }
 0x136   : > { %v615_v59 = vpop.f32.mrf.mxu1  ;;  %v551_v60 = vadd.f32 %v550_v58, %v2072_v50 }
 0x137   : > { %v616_v61 = vadd.f32 %v615_v59, %v2074_v51 }
 0x138   : > { %v653_v63 = vmax.f32 %v551_v60, 0.0 }
 0x139   : > { %v654_v0 = vmax.f32 %v616_v61, 0.0 }
 0x13a   : > { %781 = vmatmul.f32.gmra.mxu2 %v653_v63  ;;  %911 = vmatmul.f32.gmra.mxu0 %v653_v63 }
 0x13b   : > { %846 = vmatmul.f32.gmra.mxu3 %v654_v0  ;;  %976 = vmatmul.f32.gmra.mxu1 %v654_v0 }
 0x13d   : > { %v553_v5 = vpop.f32.mrf.mxu0 }
 0x13e   : > { %v618_v6 = vpop.f32.mrf.mxu1  ;;  %v554_v7 = vadd.f32 %v553_v5, %v2072_v50 }
 0x13f   : > { %v619_v8 = vadd.f32 %v618_v6, %v2074_v51 }
 0x140   : > { %v655_v11 = vmax.f32 %v554_v7, 0.0 }
 0x141   : > { %v656_v12 = vmax.f32 %v619_v8, 0.0 }
 0x142   : > { %784 = vmatmul.f32.gmra.mxu2 %v655_v11  ;;  %914 = vmatmul.f32.gmra.mxu0 %v655_v11 }
 0x143   : > { %849 = vmatmul.f32.gmra.mxu3 %v656_v12  ;;  %979 = vmatmul.f32.gmra.mxu1 %v656_v12 }
 0x145   : > { %v556_v18 = vpop.f32.mrf.mxu0 }
 0x146   : > { %v621_v19 = vpop.f32.mrf.mxu1  ;;  %v557_v21 = vadd.f32 %v556_v18, %v2072_v50 }
 0x147   : > { %v622_v22 = vadd.f32 %v621_v19, %v2074_v51 }
 0x148   : > { %v657_v24 = vmax.f32 %v557_v21, 0.0 }
 0x149   : > { %v658_v25 = vmax.f32 %v622_v22, 0.0 }
 0x14a   : > { %787 = vmatmul.f32.gmra.mxu2 %v657_v24  ;;  %917 = vmatmul.f32.gmra.mxu0 %v657_v24 }
 0x14b   : > { %852 = vmatmul.f32.gmra.mxu3 %v658_v25  ;;  %982 = vmatmul.f32.gmra.mxu1 %v658_v25 }
 0x14d   : > { %v559_v30 = vpop.f32.mrf.mxu0 }
 0x14e   : > { %v624_v31 = vpop.f32.mrf.mxu1  ;;  %v560_v34 = vadd.f32 %v559_v30, %v2072_v50 }
 0x14f   : > { %v625_v35 = vadd.f32 %v624_v31, %v2074_v51 }
 0x150   : > { %v659_v36 = vmax.f32 %v560_v34, 0.0 }
 0x151   : > { %v660_v37 = vmax.f32 %v625_v35, 0.0 }
 0x152   : > { %790 = vmatmul.f32.gmra.mxu2 %v659_v36  ;;  %920 = vmatmul.f32.gmra.mxu0 %v659_v36 }
 0x153   : > { %855 = vmatmul.f32.gmra.mxu3 %v660_v37  ;;  %985 = vmatmul.f32.gmra.mxu1 %v660_v37 }
 0x155   : > { %v562_v41 = vpop.f32.mrf.mxu0 }
 0x156   : > { %v627_v42 = vpop.f32.mrf.mxu1  ;;  %v563_v44 = vadd.f32 %v562_v41, %v2072_v50 }
 0x157   : > { %v628_v45 = vadd.f32 %v627_v42, %v2074_v51 }
 0x158   : > { %v661_v46 = vmax.f32 %v563_v44, 0.0 }
 0x159   : > { %v662_v47 = vmax.f32 %v628_v45, 0.0 }
 0x15a   : > { %793 = vmatmul.f32.gmra.mxu2 %v661_v46  ;;  %923 = vmatmul.f32.gmra.mxu0 %v661_v46 }
 0x15b   : > { %858 = vmatmul.f32.gmra.mxu3 %v662_v47  ;;  %988 = vmatmul.f32.gmra.mxu1 %v662_v47 }
 0x15d   : > { %v565_v48 = vpop.f32.mrf.mxu0 }
 0x15e   : > { %v630_v49 = vpop.f32.mrf.mxu1  ;;  %v566_v52 = vadd.f32 %v565_v48, %v2072_v50 }
 0x15f   : > { %v631_v53 = vadd.f32 %v630_v49, %v2074_v51 }
 0x160   : > { %v663_v54 = vmax.f32 %v566_v52, 0.0 }
 0x161   : > { %v664_v55 = vmax.f32 %v631_v53, 0.0 }
 0x162   : > { %796 = vmatmul.f32.gmra.mxu2 %v663_v54  ;;  %926 = vmatmul.f32.gmra.mxu0 %v663_v54 }
 0x163   : > { %861 = vmatmul.f32.gmra.mxu3 %v664_v55  ;;  %991 = vmatmul.f32.gmra.mxu1 %v664_v55 }
 0x167   : > { %v882_v58 = vpop.f32.mrf.mxu0 }
 0x168   : > { %v883_v59 = vadd.f32 %v882_v58, %v2108_v57  ;;  %v947_v60 = vpop.f32.mrf.mxu1 }
 0x16a   : > { %v948_v61 = vadd.f32 %v947_v60, %v883_v59 }
 0x16c   : > { %v996_v63 = vmax.f32 %v948_v61, 0.0 }
 0x16d   : > { %v752_v50 = vpop.f32.mrf.mxu2 }
 0x16e   : > { %v753_v51 = vadd.f32 %v752_v50, %v2111_v62  ;;  %1144 = vmatmul.f32.vlgmr.msrb.gmra.mxu3 %v996_v63  ;;  %v817_v0 = vpop.f32.mrf.mxu3 }
 0x16f   : > { %v885_v1 = vpop.f32.mrf.mxu0 }
 0x170   : > { %v818_v2 = vadd.f32 %v817_v0, %v753_v51  ;;  %v886_v3 = vadd.f32 %v885_v1, %v2108_v57  ;;  %v950_v4 = vpop.f32.mrf.mxu1 }
 0x172   : > { %v995_v5 = vmax.f32 %v818_v2, 0.0  ;;  %v951_v6 = vadd.f32 %v950_v4, %v886_v3 }
 0x174   : > { %v998_v7 = vmax.f32 %v951_v6, 0.0  ;;  %1079 = vmatmul.f32.vlgmr.msrb.gmra.mxu2 %v995_v5 }
 0x175   : > { %v755_v8 = vpop.f32.mrf.mxu2 }
 0x176   : > { %v756_v9 = vadd.f32 %v755_v8, %v2111_v62  ;;  %1147 = vmatmul.f32.gmra.mxu3 %v998_v7  ;;  %v820_v10 = vpop.f32.mrf.mxu3 }
 0x177   : > { %v888_v11 = vpop.f32.mrf.mxu0 }
 0x178   : > { %v821_v12 = vadd.f32 %v820_v10, %v756_v9  ;;  %v889_v13 = vadd.f32 %v888_v11, %v2108_v57  ;;  %v953_v14 = vpop.f32.mrf.mxu1 }
 0x17a   : > { %v954_v15 = vadd.f32 %v953_v14, %v889_v13  ;;  %v997_v16 = vmax.f32 %v821_v12, 0.0 }
 0x17c   : > { %v1000_v17 = vmax.f32 %v954_v15, 0.0  ;;  %1082 = vmatmul.f32.gmra.mxu2 %v997_v16 }
 0x17d   : > { %v758_v18 = vpop.f32.mrf.mxu2 }
 0x17e   : > { %v759_v19 = vadd.f32 %v758_v18, %v2111_v62  ;;  %1150 = vmatmul.f32.gmra.mxu3 %v1000_v17  ;;  %v823_v20 = vpop.f32.mrf.mxu3 }
 0x17f   : > { %v891_v21 = vpop.f32.mrf.mxu0 }
 0x180   : > { %v824_v22 = vadd.f32 %v823_v20, %v759_v19  ;;  %v892_v23 = vadd.f32 %v891_v21, %v2108_v57  ;;  %v956_v24 = vpop.f32.mrf.mxu1 }
 0x182   : > { %v957_v25 = vadd.f32 %v956_v24, %v892_v23  ;;  %v999_v26 = vmax.f32 %v824_v22, 0.0 }
 0x184   : > { %v1002_v27 = vmax.f32 %v957_v25, 0.0  ;;  %1085 = vmatmul.f32.gmra.mxu2 %v999_v26 }
 0x185   : > { %v761_v28 = vpop.f32.mrf.mxu2 }
 0x186   : > { %v762_v29 = vadd.f32 %v761_v28, %v2111_v62  ;;  %1153 = vmatmul.f32.gmra.mxu3 %v1002_v27  ;;  %v826_v30 = vpop.f32.mrf.mxu3 }
 0x187   : > { %v894_v31 = vpop.f32.mrf.mxu0 }
 0x188   : > { %v827_v32 = vadd.f32 %v826_v30, %v762_v29  ;;  %v895_v33 = vadd.f32 %v894_v31, %v2108_v57  ;;  %v959_v34 = vpop.f32.mrf.mxu1 }
 0x18a   : > { %v960_v35 = vadd.f32 %v959_v34, %v895_v33  ;;  %v1001_v36 = vmax.f32 %v827_v32, 0.0 }
 0x18c   : > { %v1004_v37 = vmax.f32 %v960_v35, 0.0  ;;  %1088 = vmatmul.f32.gmra.mxu2 %v1001_v36 }
 0x18d   : > { %v764_v38 = vpop.f32.mrf.mxu2 }
 0x18e   : > { %v765_v39 = vadd.f32 %v764_v38, %v2111_v62  ;;  %1156 = vmatmul.f32.gmra.mxu3 %v1004_v37  ;;  %v829_v40 = vpop.f32.mrf.mxu3 }
 0x18f   : > { %v897_v41 = vpop.f32.mrf.mxu0 }
 0x190   : > { %v830_v42 = vadd.f32 %v829_v40, %v765_v39  ;;  %v898_v43 = vadd.f32 %v897_v41, %v2108_v57  ;;  %v962_v44 = vpop.f32.mrf.mxu1 }
 0x192   : > { %v963_v45 = vadd.f32 %v962_v44, %v898_v43  ;;  %v1003_v46 = vmax.f32 %v830_v42, 0.0 }
 0x194   : > { %v1006_v47 = vmax.f32 %v963_v45, 0.0  ;;  %1091 = vmatmul.f32.gmra.mxu2 %v1003_v46 }
 0x195   : > { %v767_v48 = vpop.f32.mrf.mxu2 }
 0x196   : > { %v768_v49 = vadd.f32 %v767_v48, %v2111_v62  ;;  %1159 = vmatmul.f32.gmra.mxu3 %v1006_v47  ;;  %v832_v52 = vpop.f32.mrf.mxu3 }
 0x197   : > { %v900_v53 = vpop.f32.mrf.mxu0 }
 0x198   : > { %v833_v54 = vadd.f32 %v832_v52, %v768_v49  ;;  %v901_v55 = vadd.f32 %v900_v53, %v2108_v57  ;;  %v965_v56 = vpop.f32.mrf.mxu1 }
 0x19a   : > { %v966_v58 = vadd.f32 %v965_v56, %v901_v55  ;;  %v1005_v59 = vmax.f32 %v833_v54, 0.0 }
 0x19c   : > { %v1008_v60 = vmax.f32 %v966_v58, 0.0  ;;  %1094 = vmatmul.f32.gmra.mxu2 %v1005_v59 }
 0x19d   : > { %v770_v61 = vpop.f32.mrf.mxu2 }
 0x19e   : > { %v771_v63 = vadd.f32 %v770_v61, %v2111_v62  ;;  %1162 = vmatmul.f32.gmra.mxu3 %v1008_v60  ;;  %v835_v50 = vpop.f32.mrf.mxu3 }
 0x19f   : > { %v903_v51 = vpop.f32.mrf.mxu0 }
 0x1a0   : > { %v836_v0 = vadd.f32 %v835_v50, %v771_v63  ;;  %v904_v1 = vadd.f32 %v903_v51, %v2108_v57  ;;  %v968_v2 = vpop.f32.mrf.mxu1 }
 0x1a2   : > { %v969_v3 = vadd.f32 %v968_v2, %v904_v1  ;;  %v1007_v4 = vmax.f32 %v836_v0, 0.0 }
 0x1a4   : > { %v1010_v5 = vmax.f32 %v969_v3, 0.0  ;;  %1097 = vmatmul.f32.gmra.mxu2 %v1007_v4 }
 0x1a5   : > { %v773_v6 = vpop.f32.mrf.mxu2 }
 0x1a6   : > { %v774_v7 = vadd.f32 %v773_v6, %v2111_v62  ;;  %1165 = vmatmul.f32.gmra.mxu3 %v1010_v5  ;;  %v838_v8 = vpop.f32.mrf.mxu3 }
 0x1a7   : > { %v906_v9 = vpop.f32.mrf.mxu0 }
 0x1a8   : > { %v839_v10 = vadd.f32 %v838_v8, %v774_v7  ;;  %v907_v11 = vadd.f32 %v906_v9, %v2108_v57  ;;  %v971_v12 = vpop.f32.mrf.mxu1 }
 0x1aa   : > { %v972_v13 = vadd.f32 %v971_v12, %v907_v11  ;;  %v1009_v14 = vmax.f32 %v839_v10, 0.0 }
 0x1ac   : > { %v1012_v15 = vmax.f32 %v972_v13, 0.0  ;;  %1100 = vmatmul.f32.gmra.mxu2 %v1009_v14 }
 0x1ad   : > { %v776_v16 = vpop.f32.mrf.mxu2 }
 0x1ae   : > { %v777_v17 = vadd.f32 %v776_v16, %v2111_v62  ;;  %1168 = vmatmul.f32.gmra.mxu3 %v1012_v15  ;;  %v841_v18 = vpop.f32.mrf.mxu3 }
 0x1af   : > { %v909_v19 = vpop.f32.mrf.mxu0 }
 0x1b0   : > { %v842_v20 = vadd.f32 %v841_v18, %v777_v17  ;;  %v910_v21 = vadd.f32 %v909_v19, %v2108_v57  ;;  %v974_v22 = vpop.f32.mrf.mxu1 }
 0x1b2   : > { %v1011_v23 = vmax.f32 %v842_v20, 0.0  ;;  %v975_v24 = vadd.f32 %v974_v22, %v910_v21 }
 0x1b4   : > { %v1014_v25 = vmax.f32 %v975_v24, 0.0  ;;  %1103 = vmatmul.f32.gmra.mxu2 %v1011_v23 }
 0x1b5   : > { %v779_v26 = vpop.f32.mrf.mxu2 }
 0x1b6   : > { %v780_v27 = vadd.f32 %v779_v26, %v2111_v62  ;;  %1171 = vmatmul.f32.gmra.mxu3 %v1014_v25  ;;  %v844_v28 = vpop.f32.mrf.mxu3 }
 0x1b7   : > { %v912_v29 = vpop.f32.mrf.mxu0 }
 0x1b8   : > { %v845_v30 = vadd.f32 %v844_v28, %v780_v27  ;;  %v913_v31 = vadd.f32 %v912_v29, %v2108_v57  ;;  %v977_v32 = vpop.f32.mrf.mxu1 }
 0x1ba   : > { %v1013_v33 = vmax.f32 %v845_v30, 0.0  ;;  %v978_v34 = vadd.f32 %v977_v32, %v913_v31  ;;  %v2144_v30 = vld [vmem:[#allocation14] ss:$0 sm:$0xff] }
 0x1bc   : > { %v1016_v35 = vmax.f32 %v978_v34, 0.0  ;;  %1106 = vmatmul.f32.gmra.mxu2 %v1013_v33 }
 0x1bd   : > { %v782_v36 = vpop.f32.mrf.mxu2 }
 0x1be   : > { %v783_v37 = vadd.f32 %v782_v36, %v2111_v62  ;;  %1174 = vmatmul.f32.gmra.mxu3 %v1016_v35  ;;  %v847_v38 = vpop.f32.mrf.mxu3 }
 0x1bf   : > { %v915_v39 = vpop.f32.mrf.mxu0 }
 0x1c0   : > { %v848_v40 = vadd.f32 %v847_v38, %v783_v37  ;;  %v916_v41 = vadd.f32 %v915_v39, %v2108_v57  ;;  %v980_v42 = vpop.f32.mrf.mxu1 }
 0x1c2   : > { %v1015_v43 = vmax.f32 %v848_v40, 0.0  ;;  %v981_v44 = vadd.f32 %v980_v42, %v916_v41 }
 0x1c4   : > { %v1018_v45 = vmax.f32 %v981_v44, 0.0  ;;  %1109 = vmatmul.f32.gmra.mxu2 %v1015_v43 }
 0x1c5   : > { %v785_v46 = vpop.f32.mrf.mxu2 }
 0x1c6   : > { %v786_v47 = vadd.f32 %v785_v46, %v2111_v62  ;;  %1177 = vmatmul.f32.gmra.mxu3 %v1018_v45  ;;  %v850_v48 = vpop.f32.mrf.mxu3 }
 0x1c7   : > { %v918_v49 = vpop.f32.mrf.mxu0 }
 0x1c8   : > { %v851_v52 = vadd.f32 %v850_v48, %v786_v47  ;;  %v919_v53 = vadd.f32 %v918_v49, %v2108_v57  ;;  %v983_v54 = vpop.f32.mrf.mxu1 }
 0x1ca   : > { %v1017_v55 = vmax.f32 %v851_v52, 0.0  ;;  %v984_v56 = vadd.f32 %v983_v54, %v919_v53 }
 0x1cc   : > { %v1020_v58 = vmax.f32 %v984_v56, 0.0  ;;  %1112 = vmatmul.f32.gmra.mxu2 %v1017_v55 }
 0x1cd   : > { %v788_v59 = vpop.f32.mrf.mxu2 }
 0x1ce   : > { %v789_v60 = vadd.f32 %v788_v59, %v2111_v62  ;;  %1180 = vmatmul.f32.gmra.mxu3 %v1020_v58  ;;  %v853_v61 = vpop.f32.mrf.mxu3 }
 0x1cf   : > { %v921_v63 = vpop.f32.mrf.mxu0 }
 0x1d0   : > { %v854_v50 = vadd.f32 %v853_v61, %v789_v60  ;;  %v922_v51 = vadd.f32 %v921_v63, %v2108_v57  ;;  %v986_v0 = vpop.f32.mrf.mxu1 }
 0x1d2   : > { %v1019_v1 = vmax.f32 %v854_v50, 0.0  ;;  %v987_v2 = vadd.f32 %v986_v0, %v922_v51 }
 0x1d4   : > { %v1022_v3 = vmax.f32 %v987_v2, 0.0  ;;  %1115 = vmatmul.f32.gmra.mxu2 %v1019_v1 }
 0x1d5   : > { %v791_v4 = vpop.f32.mrf.mxu2 }
 0x1d6   : > { %v792_v5 = vadd.f32 %v791_v4, %v2111_v62  ;;  %1183 = vmatmul.f32.gmra.mxu3 %v1022_v3  ;;  %v856_v6 = vpop.f32.mrf.mxu3 }
 0x1d7   : > { %v924_v7 = vpop.f32.mrf.mxu0 }
 0x1d8   : > { %v857_v8 = vadd.f32 %v856_v6, %v792_v5  ;;  %v925_v9 = vadd.f32 %v924_v7, %v2108_v57  ;;  %v989_v10 = vpop.f32.mrf.mxu1 }
 0x1da   : > { %v1021_v11 = vmax.f32 %v857_v8, 0.0  ;;  %v990_v12 = vadd.f32 %v989_v10, %v925_v9 }
 0x1dc   : > { %v1024_v13 = vmax.f32 %v990_v12, 0.0  ;;  %1118 = vmatmul.f32.gmra.mxu2 %v1021_v11 }
 0x1dd   : > { %v794_v14 = vpop.f32.mrf.mxu2 }
 0x1de   : > { %v795_v15 = vadd.f32 %v794_v14, %v2111_v62  ;;  %1186 = vmatmul.f32.gmra.mxu3 %v1024_v13  ;;  %v859_v16 = vpop.f32.mrf.mxu3 }
 0x1df   : > { %v927_v17 = vpop.f32.mrf.mxu0 }
 0x1e0   : > { %v860_v18 = vadd.f32 %v859_v16, %v795_v15  ;;  %v928_v19 = vadd.f32 %v927_v17, %v2108_v57  ;;  %v992_v20 = vpop.f32.mrf.mxu1 }
 0x1e2   : > { %v1023_v21 = vmax.f32 %v860_v18, 0.0  ;;  %v993_v22 = vadd.f32 %v992_v20, %v928_v19 }
 0x1e4   : > { %v1026_v23 = vmax.f32 %v993_v22, 0.0  ;;  %1121 = vmatmul.f32.gmra.mxu2 %v1023_v21 }
 0x1e5   : > { %v797_v24 = vpop.f32.mrf.mxu2 }
 0x1e6   : > { %v798_v25 = vadd.f32 %v797_v24, %v2111_v62  ;;  %1189 = vmatmul.f32.gmra.mxu3 %v1026_v23  ;;  %v862_v26 = vpop.f32.mrf.mxu3 }
 0x1e8   : > { %v863_v27 = vadd.f32 %v862_v26, %v798_v25 }
 0x1ea   : > { %v1025_v28 = vmax.f32 %v863_v27, 0.0 }
 0x1ec   : > { %1124 = vmatmul.f32.gmra.mxu2 %v1025_v28 }
 0x1f1   : > { %v1145_v29 = vpop.f32.mrf.mxu3 }
 0x1f7   : > { %v1080_v31 = vpop.f32.mrf.mxu2 }
 0x1f8   : > { %v1081_v32 = vadd.f32 %v2144_v30, %v1080_v31 }
 0x1f9   : > { %v1148_v57 = vpop.f32.mrf.mxu3 }
 0x1fa   : > { %v2147_v33 = vadd.f32 %v1145_v29, %v1081_v32 }
 0x1ff   : > { %v1083_v34 = vpop.f32.mrf.mxu2 }
 0x200   : > { %v1084_v35 = vadd.f32 %v2144_v30, %v1083_v34 }
 0x201   : > { %v1151_v36 = vpop.f32.mrf.mxu3 }
 0x202   : > { %v2150_v37 = vadd.f32 %v1148_v57, %v1084_v35 }
 0x207   : > { %v1086_v62 = vpop.f32.mrf.mxu2 }
 0x208   : > { %v1087_v38 = vadd.f32 %v2144_v30, %v1086_v62 }
 0x209   : > { %v1154_v39 = vpop.f32.mrf.mxu3 }
 0x20a   : > { %v2153_v40 = vadd.f32 %v1151_v36, %v1087_v38 }
 0x20f   : > { %v1089_v41 = vpop.f32.mrf.mxu2 }
 0x210   : > { %v1090_v42 = vadd.f32 %v2144_v30, %v1089_v41  ;;  %v1541_v41 = vld [vmem:[#allocation2] ss:$0 sm:$0xff] }
 0x211   : > { %v1157_v43 = vpop.f32.mrf.mxu3 }
 0x212   : > { %v2156_v44 = vadd.f32 %v1154_v39, %v1090_v42  ;;  %v1846_v42 = vmov 0  }
 0x213   : > { %1539 = vset.pattern.permute.xlu0 %v1846_v42 }
 0x214   : > { %1214 = vperm.xlu0 %1539, %v1541_v41  }
 0x217   : > { %v1092_v45 = vpop.f32.mrf.mxu2 }
 0x218   : > { %v1093_v46 = vadd.f32 %v2144_v30, %v1092_v45 }
 0x219   : > { %v1160_v47 = vpop.f32.mrf.mxu3 }
 0x21a   : > { %v2159_v48 = vadd.f32 %v1157_v43, %v1093_v46  ;;  %v1196_v46 = vmax.f32 %v2156_v44, 0.0 }
 0x21c   : > { %v1197_v45 = vmax.f32 %v2159_v48, 0.0 }
 0x21f   : > { %v1095_v49 = vpop.f32.mrf.mxu2 }
 0x220   : > { %v1096_v52 = vadd.f32 %v2144_v30, %v1095_v49  ;;  %v1194_v49 = vmax.f32 %v2150_v37, 0.0 }
 0x221   : > { %v1163_v53 = vpop.f32.mrf.mxu3 }
 0x222   : > { %v2162_v54 = vadd.f32 %v1160_v47, %v1096_v52  ;;  %v1195_v47 = vmax.f32 %v2153_v40, 0.0  ;;  %v1193_v52 = vmax.f32 %v2147_v33, 0.0 }
 0x227   : > { %v1098_v55 = vpop.f32.mrf.mxu2 }
 0x228   : > { %v1099_v56 = vadd.f32 %v2144_v30, %v1098_v55 }
 0x229   : > { %v1166_v58 = vpop.f32.mrf.mxu3 }
 0x22a   : > { %v1164_v59 = vadd.f32 %v1163_v53, %v1099_v56  ;;  %v1209_v53 = vld [vmem:[%s2224_s7] sm:$0xff] }
 0x22c   : > { %v1199_v43 = vmax.f32 %v1164_v59, 0.0 }
 0x22f   : > { %v1101_v60 = vpop.f32.mrf.mxu2 }
 0x230   : > { %v1102_v61 = vadd.f32 %v2144_v30, %v1101_v60 }
 0x231   : > { %v1169_v63 = vpop.f32.mrf.mxu3 }
 0x232   : > { %v1167_v50 = vadd.f32 %v1166_v58, %v1102_v61 }
 0x234   : > { %v1200_v39 = vmax.f32 %v1167_v50, 0.0 }
 0x237   : > { %v1104_v51 = vpop.f32.mrf.mxu2 }
 0x238   : > { %v1105_v0 = vadd.f32 %v2144_v30, %v1104_v51 }
 0x239   : > { %v1172_v1 = vpop.f32.mrf.mxu3 }
 0x23a   : > { %v1170_v2 = vadd.f32 %v1169_v63, %v1105_v0 }
 0x23c   : > { %v1201_v38 = vmax.f32 %v1170_v2, 0.0 }
 0x23f   : > { %v1107_v3 = vpop.f32.mrf.mxu2 }
 0x240   : > { %v1108_v4 = vadd.f32 %v2144_v30, %v1107_v3 }
 0x241   : > { %v1175_v5 = vpop.f32.mrf.mxu3 }
 0x242   : > { %v1173_v6 = vadd.f32 %v1172_v1, %v1108_v4 }
 0x244   : > { %v1202_v62 = vmax.f32 %v1173_v6, 0.0 }
 0x247   : > { %v1110_v7 = vpop.f32.mrf.mxu2 }
 0x248   : > { %v1111_v31 = vadd.f32 %v2144_v30, %v1110_v7 }
 0x249   : > { %v1178_v8 = vpop.f32.mrf.mxu3 }
 0x24a   : > { %v1176_v34 = vadd.f32 %v1175_v5, %v1111_v31 }
 0x24c   : > { %v1203_v36 = vmax.f32 %v1176_v34, 0.0 }
 0x24f   : > { %v1113_v9 = vpop.f32.mrf.mxu2 }
 0x250   : > { %v1114_v27 = vadd.f32 %v2144_v30, %v1113_v9 }
 0x251   : > { %v1181_v10 = vpop.f32.mrf.mxu3 }
 0x252   : > { %v1179_v32 = vadd.f32 %v1178_v8, %v1114_v27 }
 0x254   : > { %v1204_v35 = vmax.f32 %v1179_v32, 0.0 }
 0x257   : > { %v1116_v11 = vpop.f32.mrf.mxu2 }
 0x258   : > { %v1117_v24 = vadd.f32 %v2144_v30, %v1116_v11 }
 0x259   : > { %v1184_v12 = vpop.f32.mrf.mxu3 }
 0x25a   : > { %v1182_v28 = vadd.f32 %v1181_v10, %v1117_v24 }
 0x25c   : > { %v1205_v57 = vmax.f32 %v1182_v28, 0.0 }
 0x25f   : > { %v1119_v13 = vpop.f32.mrf.mxu2 }
 0x260   : > { %v1120_v21 = vadd.f32 %v2144_v30, %v1119_v13 }
 0x261   : > { %v1187_v14 = vpop.f32.mrf.mxu3 }
 0x262   : > { %v1185_v25 = vadd.f32 %v1184_v12, %v1120_v21 }
 0x264   : > { %v1206_v29 = vmax.f32 %v1185_v25, 0.0 }
 0x267   : > { %v1122_v15 = vpop.f32.mrf.mxu2 }
 0x268   : > { %v1123_v17 = vadd.f32 %v2144_v30, %v1122_v15 }
 0x269   : > { %v1190_v19 = vpop.f32.mrf.mxu3 }
 0x26a   : > { %v1188_v22 = vadd.f32 %v1187_v14, %v1123_v17 }
 0x26c   : > { %v1207_v26 = vmax.f32 %v1188_v22, 0.0 }
 0x26f   : > { %v1125_v16 = vpop.f32.mrf.mxu2 }
 0x270   : > { %v1126_v18 = vadd.f32 %v2144_v30, %v1125_v16  ;;  %v1198_v30 = vmax.f32 %v2162_v54, 0.0 }
 0x272   : > { %v1191_v20 = vadd.f32 %v1190_v19, %v1126_v18 }
 0x274   : > { %v1208_v23 = vmax.f32 %v1191_v20, 0.0 }
 0x276   : > { %1217 = vmatpush.xpose.msra.mxu0 %v1208_v23 }
 0x27a   : > { %1218 = vmatpush.xpose.msra.mxu0 %v1207_v26 }
 0x27e   : > { %1219 = vmatpush.xpose.msra.mxu0 %v1206_v29 }
 0x282   : > { %1220 = vmatpush.xpose.msra.mxu0 %v1205_v57 }
 0x286   : > { %1221 = vmatpush.xpose.msra.mxu0 %v1204_v35  ;;  %v1215_v48 = vpop.permute.xlu0 %1214 }
 0x28a   : > { %1222 = vmatpush.xpose.msra.mxu0 %v1203_v36 }
 0x28e   : > { %1223 = vmatpush.xpose.msra.mxu0 %v1202_v62 }
 0x292   : > { %1224 = vmatpush.xpose.msra.mxu0 %v1201_v38 }
 0x296   : > { %1225 = vmatpush.xpose.msra.mxu0 %v1200_v39 }
 0x29a   : > { %1226 = vmatpush.xpose.msra.mxu0 %v1199_v43 }
 0x29e   : > { %1227 = vmatpush.xpose.msra.mxu0 %v1198_v30 }
 0x2a2   : > { %1228 = vmatpush.xpose.msra.mxu0 %v1197_v45 }
 0x2a6   : > { %1229 = vmatpush.xpose.msra.mxu0 %v1196_v46 }
 0x2aa   : > { %1230 = vmatpush.xpose.msra.mxu0 %v1195_v47 }
 0x2ae   : > { %1231 = vmatpush.xpose.msra.mxu0 %v1194_v49 }
 0x2b2   : > { %1232 = vmatpush.xpose.msra.mxu0 %v1193_v52 }
 0x2b5   : > { %1233 = vmatmul.f32.vlgmr.msra.gmra.mxu0 %v1209_v53 }
 0x332   : > { %v1234_v54 = vpop.f32.mrf.mxu0 }
 0x333   : > { %v1235_v44 = vadd.f32 %v1234_v54, %v1215_v48 }
 0x335   : > { %v1421_v55 = vmul.f32 -1.442695, %v1235_v44 }
 0x337   : > { %1542 = vpow2.f32 %v1421_v55 }
 0x33d   : > { %v1543_v40 = vpop.eup %1542 }
 0x33e   : > { %v1240_v56 = vadd.f32 1.0, %v1543_v40 }
 0x340   : > { %1544 = vrcp.f32 %v1240_v56  ;;  %v1252_v33 = vand.u32 2147483648, %v1240_v56  ;;  %v1250_v61 = vand.u32 2147483647, %v1240_v56  ;;  %vm1246_vm1 = vweird.f32 %v1240_v56 }
 0x342   : > { %v1253_v50 = vor.u32 1.1754944e-38, %v1252_v33  ;;  %vm1251_vm3 = vcmp.eq.f32.partialorder %v1250_v61, 8.507059e+37 }
 0x346   : > { %v1545_v58 = vpop.eup %1544 }
 0x347   : > { %v1242_v37 = vmul.f32 %v1545_v58, %v1240_v56  ;;  %vm1247_vm0 = vweird.f32 %v1545_v58 }
 0x348   : > { %vm1248_vm2 = vmor %vm1246_vm1, %vm1247_vm0 }
 0x349   : > { %v1243_v59 = vsub.f32 1.0, %v1242_v37 }
 0x34b   : > { %v1244_v60 = vmul.f32 %v1545_v58, %v1243_v59 }
 0x34d   : > { %v1245_v63 = vadd.f32 %v1545_v58, %v1244_v60 }
 0x34f   : > { %v1249_v51 = vsel %vm1248_vm2, %v1545_v58, %v1245_v63 }
 0x350   : > { %v1254_v0 = vsel %vm1251_vm3, %v1253_v50, %v1249_v51 }
 0x351   : > { %1256 = vst [vmem:[%s447_s19] sm:$0xff] %v1254_v0 }
 0x352   : > { %1783 = shalt.err (!%p1780_p9)
}
 0x353   : > { %1453 = dma.vmem_to_hbm [thread:$0]  (%p2000_p4), %s1271_s21, 128, %s1273_s29, %s1258_s17  }
 0x354 PF: > { %s1284_s23 = sand.u32 1, %s1822_s11   ;;  %p2244_p10 = scmp.ge.s32.totalorder %s1834_s14, 2 }
 0x355   : > { %s1285_s25 = scalar_lea.sflag [#allocation5], %s1284_s23 }
 0x356   : > { %p1479_p13 = pnand %p2244_p10, %p2004_p6 }
 0x358   : > { %p1480_p11 = pneg %p1479_p13 }
 0x35a   : > { %1817 = dma.done.wait (%p1480_p11), %s1285_s25, 128  }
 0x35b   : > { %1819 = vsyncadd (%p1480_p11), %s1285_s25, 4294967168  ;;  %p27_p0 = scmp.ge.s32.totalorder %s1974_s16, 4   ;;  %s2245_s11 = smov %s1826_s12 }
 0x35c   : > { %s2246_s12 = smov %s1830_s13  ;;  %s2247_s13 = smov %s1985_s28 }
 0x35d   : > { %s2248_s14 = smov %s1974_s16  ;;  %29 = sbr.rel (!%p27_p0) target bundleno = 12 (0xc), region = 125 }
 0x362   :  { %1291 = vsyncpa [#allocation4], 1 }
 0x363   :  { %1293 = vsyncpa [#allocation4 + $0x1], 1 }
 0x364   :  { %1294 = vsyncpa [#allocation7], 1 }
 0x365   :  { %1295 = vsyncpa [#allocation10], 1 }
 0x366   :  { %1296 = vsyncpa [#allocation13], 1 }
 0x367   :  { %1297 = vsyncpa [#allocation5], 1 }
 0x368   :  { %1299 = vsyncpa [#allocation5 + $0x1], 1 }

</bundles_post_ra>
